<compile_context>
chip_gen: v7x
topology: tpu7x:2x2x1
jax: 0.10.0
libtpu: 0.0.40
codegen_flags: <defaults>
</compile_context>

<pallas_src>
import numpy as np
import jax
import jax.numpy as jnp
from jax.experimental import pallas as pl
from jax.experimental.pallas import tpu as pltpu

LAYER_DIMS1 = [514, 256, 128, 64, 32, 4]
LAYER_DIMS2 = [516, 256, 128, 64, 32, 4]
LATENT = 512
BN_EPS = 1e-5

# bf16 matmul operands (f32 accumulation).  The self-test below compares against a
# reference that uses the same bf16 operand quantization, so the check stays tight;
# vs. a pure-f32 reference the deviation is bounded by bf16 quantization (~1e-2).
USE_BF16 = True


# --------------------------------- kernel ----------------------------------------

def make_decoder_kernel(B, tile_m, n_layers, compute_dtype):
    """Fused decoder for one m-tile: both folds, all Linear+BN+ReLU layers."""

    def kernel(*refs):
        out_ref = refs[-1]
        it = iter(refs[:-1])

        xa1 = next(it)[...]      # (B, 256) f32: x @ Wa1 + b1 (first-layer latent term)
        xa2 = next(it)[...]      # (B, 256) f32: x @ Wa2 + b2
        gpts = next(it)[...]     # (TILE_M, 2) compute dtype: folding grid tile

        def sum_over_batch(col):                      # (B*TM, 1) -> (TM, 1)
            acc = col[0:tile_m]
            for b in range(1, B):
                acc = acc + col[b * tile_m:(b + 1) * tile_m]
            return acc

        def rows_from_channel(col):                   # (TM, 1) -> (B*TM, 1)
            return jnp.concatenate([col] * B, axis=0)

        def bn_relu(y, bn_tile, layer):
            # Training-mode BatchNorm1d(num_features=m) on a conceptual (B, m, F)
            # tensor: per point-channel stats over (batch, feature), biased variance,
            # eps=1e-5.  Two-pass (centered) variance, all in f32.
            F = y.shape[-1]
            inv_n = 1.0 / (B * F)
            mean_c = sum_over_batch(jnp.sum(y, axis=1, keepdims=True)) * inv_n
            centered = y - rows_from_channel(mean_c)
            var_c = sum_over_batch(
                jnp.sum(centered * centered, axis=1, keepdims=True)) * inv_n
            gamma = bn_tile[:, 2 * layer:2 * layer + 1]          # (TM, 1)
            beta = bn_tile[:, 2 * layer + 1:2 * layer + 2]       # (TM, 1)
            scale = rows_from_channel(gamma * jax.lax.rsqrt(var_c + BN_EPS))
            shift = rows_from_channel(beta)
            return jnp.maximum(centered * scale + shift, 0.0)

        def rest_layers(h, bn_tile):
            # Remaining Linear layers: batch folded into the MXU M dimension,
            # bf16 operands, f32 accumulation, activations kept 2-D throughout.
            for l in range(1, n_layers):
                w = next(it)[...]                                 # (F, O) compute dtype
                b = next(it)[...]                                 # (1, O) f32
                y = jnp.dot(h.astype(compute_dtype), w,
                            preferred_element_type=jnp.float32) + b
                h = bn_relu(y, bn_tile, l)
            return h

        # -------------------------------- fold 1 --------------------------------
        bn1 = next(it)[...]      # (TILE_M, 2*n_layers) f32: packed gamma/beta
        wb1 = next(it)[...]      # (2, 256) compute dtype: grid rows of first W
        # concat([x_rep, grid]) @ W1 == x @ Wa1 (precomputed) + grid @ Wb1
        extra1 = jnp.dot(gpts, wb1, preferred_element_type=jnp.float32)   # (TM, 256)
        y = jnp.concatenate([extra1 + xa1[b:b + 1, :] for b in range(B)], axis=0)
        h = bn_relu(y, bn1, 0)
        fold1 = rest_layers(h, bn1)                               # (B*TM, 4)

        # -------------------------------- fold 2 --------------------------------
        bn2 = next(it)[...]
        wb2 = next(it)[...]      # (4, 256) compute dtype: fold1 rows of first W
        extra2 = jnp.dot(fold1.astype(compute_dtype), wb2,
                         preferred_element_type=jnp.float32)      # (B*TM, 256)
        y = jnp.concatenate(
            [extra2[b * tile_m:(b + 1) * tile_m] + xa2[b:b + 1, :] for b in range(B)],
            axis=0)
        h = bn_relu(y, bn2, 0)
        fold2 = rest_layers(h, bn2)                               # (B*TM, 4)

        for b in range(B):
            out_ref[b, :, :] = fold2[b * tile_m:(b + 1) * tile_m, :]

    return kernel


# --------------------------------- wrapper ----------------------------------------

def _pick_tile_m(m, max_tile=512):
    # Largest multiple-of-8 divisor of m that is <= max_tile (v7x-safe default).
    # On v6e/v5e (128 MiB VMEM) max_tile can be raised to 1024-2048 for B~8.
    best = None
    for t in range(8, min(m, max_tile) + 1, 8):
        if m % t == 0:
            best = t
    return best if best is not None else m


def _vmem_limit_bytes():
    try:
        cap = pltpu.get_tpu_info().vmem_capacity_bytes
        return int(min(100 * 1024 * 1024, cap * 3 // 4))   # ~96 MiB v5e/v6e, ~48 MiB v7x
    except Exception:
        return 32 * 1024 * 1024


def decoder_forward(x, grid_pts, params1, params2, *, tile_m=None):
    """x: (B, 1, 512); grid_pts: (m, 2);
    params*: list of (W(in,out), b(1,out), gamma(m,), beta(m,))."""
    B = x.shape[0]
    m = grid_pts.shape[0]
    n_layers = len(params1)
    x2d = x.reshape(B, LATENT)
    cdt = jnp.bfloat16 if USE_BF16 else jnp.float32

    if tile_m is None:
        tile_m = _pick_tile_m(m)
    assert m % tile_m == 0 and (tile_m % 8 == 0 or tile_m == m), (m, tile_m)

    def prep(params):
        # Split the first-layer weight into latent rows (Wa) and concat-extra rows
        # (Wb); hoist the latent matmul (+ first bias) out of the per-tile loop.
        W0, b0, _, _ = params[0]
        wa = W0[:LATENT].astype(cdt)
        wb = W0[LATENT:].astype(cdt)
        xa = jnp.dot(x2d.astype(cdt), wa,
                     preferred_element_type=jnp.float32) + b0          # (B, 256) f32
        rest = []
        for (W, b, _, _) in params[1:]:
            rest += [W.astype(cdt), b]
        # Pack all gamma/beta lane-dense: column 2l = gamma_l, 2l+1 = beta_l.
        cols = []
        for (_, _, g, be) in params:
            cols += [g.reshape(m, 1), be.reshape(m, 1)]
        bn = jnp.concatenate(cols, axis=1).astype(jnp.float32)          # (m, 2L)
        return xa, wb, rest, bn

    xa1, wb1, rest1, bn1 = prep(params1)
    xa2, wb2, rest2, bn2 = prep(params2)

    inputs = ([xa1, xa2, grid_pts.astype(cdt), bn1, wb1] + rest1
              + [bn2, wb2] + rest2)

    def full_spec(arr):
        shp = tuple(arr.shape)
        return pl.BlockSpec(shp, lambda i, _s=shp: (0,) * len(_s))     # resident

    grid_tile_spec = pl.BlockSpec((tile_m, 2), lambda i: (i, 0))
    bn_tile_spec = pl.BlockSpec((tile_m, 2 * n_layers), lambda i: (i, 0))

    in_specs = ([full_spec(xa1), full_spec(xa2), grid_tile_spec, bn_tile_spec,
                 full_spec(wb1)]
                + [full_spec(a) for a in rest1]
                + [bn_tile_spec, full_spec(wb2)]
                + [full_spec(a) for a in rest2])

    out_specs = pl.BlockSpec((B, tile_m, LAYER_DIMS1[-1]), lambda i: (0, i, 0))

    kernel = make_decoder_kernel(B, tile_m, n_layers, cdt)
    return pl.pallas_call(
        kernel,
        out_shape=jax.ShapeDtypeStruct((B, m, LAYER_DIMS1[-1]), jnp.float32),
        grid=(m // tile_m,),
        in_specs=in_specs,
        out_specs=out_specs,
        compiler_params=pltpu.CompilerParams(
            dimension_semantics=("parallel",),
            vmem_limit_bytes=_vmem_limit_bytes()),
    )(*inputs)


# ----------------- parameter / input construction (plain-JAX glue) -----------------

def make_grid(num_pts_per_patch):
    m_root = int(np.sqrt(num_pts_per_patch))
    d = jnp.linspace(0.0, np.pi, m_root)
    gx, gy = jnp.meshgrid(d, d, indexing='ij')          # torch.meshgrid default 'ij'
    return jnp.stack([gx, gy], axis=2).reshape(-1, 2).astype(jnp.float32)


def init_mlp(key, layer_dims, m):
    params = []
    for in_f, out_f in zip(layer_dims, layer_dims[1:]):
        key, k1, k2 = jax.random.split(key, 3)
        bound = 1.0 / np.sqrt(in_f)
        W = jax.random.uniform(k1, (in_f, out_f), jnp.float32, -bound, bound)
        b = jax.random.uniform(k2, (1, out_f), jnp.float32, -bound, bound)
        gamma = jnp.ones((m,), jnp.float32)              # BatchNorm1d default init
        beta = jnp.zeros((m,), jnp.float32)
        params.append((W, b, gamma, beta))
    return params, key


def reference(x, grid_pts, params1, params2):
    """Pure-JAX reference of the PyTorch forward (training-mode BN), using the same
    matmul-operand precision as the kernel so the correctness check stays tight."""
    B = x.shape[0]
    m = grid_pts.shape[0]
    cdt = jnp.bfloat16 if USE_BF16 else jnp.float32
    xr = jnp.broadcast_to(x, (B, m, x.shape[-1]))
    gb = jnp.broadcast_to(grid_pts[None], (B, m, grid_pts.shape[-1]))

    def apply_mlp(h, params):
        for (W, b, g, be) in params:
            y = jnp.einsum('bmf,fo->bmo', h.astype(cdt), W.astype(cdt),
                           preferred_element_type=jnp.float32) + b
            mean = jnp.mean(y, axis=(0, 2), keepdims=True)
            var = jnp.mean((y - mean) ** 2, axis=(0, 2), keepdims=True)
            y = (y - mean) / jnp.sqrt(var + BN_EPS) * g.reshape(1, m, 1) \
                + be.reshape(1, m, 1)
            h = jnp.maximum(y, 0.0)
        return h

    fold1 = apply_mlp(jnp.concatenate([xr, gb], axis=-1), params1)
    fold2 = apply_mlp(jnp.concatenate([xr, fold1], axis=-1), params2)
    return fold2


if __name__ == "__main__":
    num_pts_per_patch = 16          # m_root = 4, m = 16
    B = 2

    grid_pts = make_grid(num_pts_per_patch)
    m = grid_pts.shape[0]

    key = jax.random.PRNGKey(0)
    key, kx = jax.random.split(key)
    x = jax.random.normal(kx, (B, 1, LATENT), jnp.float32)

    params1, key = init_mlp(key, LAYER_DIMS1, m)
    params2, key = init_mlp(key, LAYER_DIMS2, m)

    # tile_m=8 -> 2-step m-grid, exercises the blocked/pipelined path at toy size.
    out = decoder_forward(x, grid_pts, params1, params2, tile_m=8)
    out = jax.block_until_ready(out)

    ref = reference(x, grid_pts, params1, params2)
    assert out.shape == (B, m, LAYER_DIMS1[-1]), out.shape
    np.testing.assert_allclose(np.asarray(out), np.asarray(ref),
                               rtol=1e-3, atol=1e-3)
    print("KERNEL_OK")
</pallas_src>

<mosaic_0001>
module attributes {stable_mosaic.version = 11 : i64} {
  func.func @kernel(%arg0: i32, %arg1: memref<2x256xf32, #tpu.memory_space<vmem>>, %arg2: memref<2x256xf32, #tpu.memory_space<vmem>>, %arg3: memref<8x2xbf16, #tpu.memory_space<vmem>>, %arg4: memref<8x10xf32, #tpu.memory_space<vmem>>, %arg5: memref<2x256xbf16, #tpu.memory_space<vmem>>, %arg6: memref<256x128xbf16, #tpu.memory_space<vmem>>, %arg7: memref<1x128xf32, #tpu.memory_space<vmem>>, %arg8: memref<128x64xbf16, #tpu.memory_space<vmem>>, %arg9: memref<1x64xf32, #tpu.memory_space<vmem>>, %arg10: memref<64x32xbf16, #tpu.memory_space<vmem>>, %arg11: memref<1x32xf32, #tpu.memory_space<vmem>>, %arg12: memref<32x4xbf16, #tpu.memory_space<vmem>>, %arg13: memref<1x4xf32, #tpu.memory_space<vmem>>, %arg14: memref<8x10xf32, #tpu.memory_space<vmem>>, %arg15: memref<4x256xbf16, #tpu.memory_space<vmem>>, %arg16: memref<256x128xbf16, #tpu.memory_space<vmem>>, %arg17: memref<1x128xf32, #tpu.memory_space<vmem>>, %arg18: memref<128x64xbf16, #tpu.memory_space<vmem>>, %arg19: memref<1x64xf32, #tpu.memory_space<vmem>>, %arg20: memref<64x32xbf16, #tpu.memory_space<vmem>>, %arg21: memref<1x32xf32, #tpu.memory_space<vmem>>, %arg22: memref<32x4xbf16, #tpu.memory_space<vmem>>, %arg23: memref<1x4xf32, #tpu.memory_space<vmem>>, %arg24: memref<2x8x4xf32, #tpu.memory_space<vmem>>) attributes {dimension_semantics = [#tpu.dimension_semantics<parallel>], iteration_bounds = array<i64: 2>, scalar_prefetch = 0 : i64, scratch_operands = 0 : i64, tpu.core_type = #tpu.core_type<tc>, window_params = [{pipeline_mode = #tpu.pipeline_mode<synchronous>, transform_indices = @transform_0, window_bounds = array<i64: 2, 256>}, {pipeline_mode = #tpu.pipeline_mode<synchronous>, transform_indices = @transform_1, window_bounds = array<i64: 2, 256>}, {transform_indices = @transform_2, window_bounds = array<i64: 8, 2>}, {transform_indices = @transform_3, window_bounds = array<i64: 8, 10>}, {pipeline_mode = #tpu.pipeline_mode<synchronous>, transform_indices = @transform_4, window_bounds = array<i64: 2, 256>}, {pipeline_mode = #tpu.pipeline_mode<synchronous>, transform_indices = @transform_5, window_bounds = array<i64: 256, 128>}, {pipeline_mode = #tpu.pipeline_mode<synchronous>, transform_indices = @transform_6, window_bounds = array<i64: 1, 128>}, {pipeline_mode = #tpu.pipeline_mode<synchronous>, transform_indices = @transform_7, window_bounds = array<i64: 128, 64>}, {pipeline_mode = #tpu.pipeline_mode<synchronous>, transform_indices = @transform_8, window_bounds = array<i64: 1, 64>}, {pipeline_mode = #tpu.pipeline_mode<synchronous>, transform_indices = @transform_9, window_bounds = array<i64: 64, 32>}, {pipeline_mode = #tpu.pipeline_mode<synchronous>, transform_indices = @transform_10, window_bounds = array<i64: 1, 32>}, {pipeline_mode = #tpu.pipeline_mode<synchronous>, transform_indices = @transform_11, window_bounds = array<i64: 32, 4>}, {pipeline_mode = #tpu.pipeline_mode<synchronous>, transform_indices = @transform_12, window_bounds = array<i64: 1, 4>}, {transform_indices = @transform_13, window_bounds = array<i64: 8, 10>}, {pipeline_mode = #tpu.pipeline_mode<synchronous>, transform_indices = @transform_14, window_bounds = array<i64: 4, 256>}, {pipeline_mode = #tpu.pipeline_mode<synchronous>, transform_indices = @transform_15, window_bounds = array<i64: 256, 128>}, {pipeline_mode = #tpu.pipeline_mode<synchronous>, transform_indices = @transform_16, window_bounds = array<i64: 1, 128>}, {pipeline_mode = #tpu.pipeline_mode<synchronous>, transform_indices = @transform_17, window_bounds = array<i64: 128, 64>}, {pipeline_mode = #tpu.pipeline_mode<synchronous>, transform_indices = @transform_18, window_bounds = array<i64: 1, 64>}, {pipeline_mode = #tpu.pipeline_mode<synchronous>, transform_indices = @transform_19, window_bounds = array<i64: 64, 32>}, {pipeline_mode = #tpu.pipeline_mode<synchronous>, transform_indices = @transform_20, window_bounds = array<i64: 1, 32>}, {pipeline_mode = #tpu.pipeline_mode<synchronous>, transform_indices = @transform_21, window_bounds = array<i64: 32, 4>}, {pipeline_mode = #tpu.pipeline_mode<synchronous>, transform_indices = @transform_22, window_bounds = array<i64: 1, 4>}, {transform_indices = @transform_23, window_bounds = array<i64: 2, 8, 4>}]} {
    %c0 = arith.constant 0 : index
    %c0_0 = arith.constant 0 : index
    %0 = vector.load %arg1[%c0, %c0_0] : memref<2x256xf32, #tpu.memory_space<vmem>>, vector<2x256xf32>
    %c0_1 = arith.constant 0 : index
    %c0_2 = arith.constant 0 : index
    %1 = vector.load %arg2[%c0_1, %c0_2] : memref<2x256xf32, #tpu.memory_space<vmem>>, vector<2x256xf32>
    %c0_3 = arith.constant 0 : index
    %c0_4 = arith.constant 0 : index
    %2 = vector.load %arg3[%c0_3, %c0_4] : memref<8x2xbf16, #tpu.memory_space<vmem>>, vector<8x2xbf16>
    %c0_5 = arith.constant 0 : index
    %c0_6 = arith.constant 0 : index
    %3 = vector.load %arg4[%c0_5, %c0_6] : memref<8x10xf32, #tpu.memory_space<vmem>>, vector<8x10xf32>
    %c0_7 = arith.constant 0 : index
    %c0_8 = arith.constant 0 : index
    %4 = vector.load %arg5[%c0_7, %c0_8] : memref<2x256xbf16, #tpu.memory_space<vmem>>, vector<2x256xbf16>
    %cst = arith.constant dense<0.000000e+00> : vector<8x256xf32>
    %5 = tpu.matmul %2, %4, %cst {dimension_numbers = #tpu.dot_dimension_numbers<[1], [0], [0], [1], [0, 0, 1, 1], [], []>} : vector<8x2xbf16>, vector<2x256xbf16>, vector<8x256xf32> -> vector<8x256xf32>
    %6 = vector.extract_strided_slice %0 {offsets = [0, 0], sizes = [1, 256], strides = [1, 1]} : vector<2x256xf32> to vector<1x256xf32>
    %7 = vector.broadcast %6 : vector<1x256xf32> to vector<8x256xf32>
    %8 = arith.addf %5, %7 : vector<8x256xf32>
    %9 = vector.extract_strided_slice %0 {offsets = [1, 0], sizes = [1, 256], strides = [1, 1]} : vector<2x256xf32> to vector<1x256xf32>
    %10 = vector.broadcast %9 : vector<1x256xf32> to vector<8x256xf32>
    %11 = arith.addf %5, %10 : vector<8x256xf32>
    %12 = tpu.concatenate %8, %11 in 0 : vector<8x256xf32>, vector<8x256xf32> -> vector<16x256xf32>
    %cst_9 = arith.constant dense<0.000000e+00> : vector<16xf32>
    %13 = vector.multi_reduction <add>, %12, %cst_9 [1] : vector<16x256xf32> to vector<16xf32>
    %14 = vector.shape_cast %13 : vector<16xf32> to vector<16x1xf32>
    %15 = vector.extract_strided_slice %14 {offsets = [0, 0], sizes = [8, 1], strides = [1, 1]} : vector<16x1xf32> to vector<8x1xf32>
    %16 = vector.extract_strided_slice %14 {offsets = [8, 0], sizes = [8, 1], strides = [1, 1]} : vector<16x1xf32> to vector<8x1xf32>
    %17 = arith.addf %15, %16 : vector<8x1xf32>
    %cst_10 = arith.constant 0.001953125 : f32
    %18 = vector.broadcast %cst_10 : f32 to vector<8x1xf32>
    %19 = arith.mulf %17, %18 : vector<8x1xf32>
    %20 = tpu.concatenate %19, %19 in 0 : vector<8x1xf32>, vector<8x1xf32> -> vector<16x1xf32>
    %21 = vector.broadcast %20 : vector<16x1xf32> to vector<16x256xf32>
    %22 = arith.subf %12, %21 : vector<16x256xf32>
    %23 = arith.mulf %22, %22 : vector<16x256xf32>
    %cst_11 = arith.constant dense<0.000000e+00> : vector<16xf32>
    %24 = vector.multi_reduction <add>, %23, %cst_11 [1] : vector<16x256xf32> to vector<16xf32>
    %25 = vector.shape_cast %24 : vector<16xf32> to vector<16x1xf32>
    %26 = vector.extract_strided_slice %25 {offsets = [0, 0], sizes = [8, 1], strides = [1, 1]} : vector<16x1xf32> to vector<8x1xf32>
    %27 = vector.extract_strided_slice %25 {offsets = [8, 0], sizes = [8, 1], strides = [1, 1]} : vector<16x1xf32> to vector<8x1xf32>
    %28 = arith.addf %26, %27 : vector<8x1xf32>
    %cst_12 = arith.constant 0.001953125 : f32
    %29 = vector.broadcast %cst_12 : f32 to vector<8x1xf32>
    %30 = arith.mulf %28, %29 : vector<8x1xf32>
    %31 = vector.extract_strided_slice %3 {offsets = [0, 0], sizes = [8, 1], strides = [1, 1]} : vector<8x10xf32> to vector<8x1xf32>
    %32 = vector.extract_strided_slice %3 {offsets = [0, 1], sizes = [8, 1], strides = [1, 1]} : vector<8x10xf32> to vector<8x1xf32>
    %cst_13 = arith.constant 9.99999974E-6 : f32
    %33 = vector.broadcast %cst_13 : f32 to vector<8x1xf32>
    %34 = arith.addf %30, %33 : vector<8x1xf32>
    %35 = math.rsqrt %34 : vector<8x1xf32>
    %36 = arith.mulf %31, %35 : vector<8x1xf32>
    %37 = tpu.concatenate %36, %36 in 0 : vector<8x1xf32>, vector<8x1xf32> -> vector<16x1xf32>
    %38 = tpu.concatenate %32, %32 in 0 : vector<8x1xf32>, vector<8x1xf32> -> vector<16x1xf32>
    %39 = vector.broadcast %37 : vector<16x1xf32> to vector<16x256xf32>
    %40 = arith.mulf %22, %39 : vector<16x256xf32>
    %41 = vector.broadcast %38 : vector<16x1xf32> to vector<16x256xf32>
    %42 = arith.addf %40, %41 : vector<16x256xf32>
    %cst_14 = arith.constant 0.000000e+00 : f32
    %43 = vector.broadcast %cst_14 : f32 to vector<16x256xf32>
    %44 = arith.maximumf %42, %43 : vector<16x256xf32>
    %c0_15 = arith.constant 0 : index
    %c0_16 = arith.constant 0 : index
    %45 = vector.load %arg6[%c0_15, %c0_16] : memref<256x128xbf16, #tpu.memory_space<vmem>>, vector<256x128xbf16>
    %c0_17 = arith.constant 0 : index
    %c0_18 = arith.constant 0 : index
    %46 = vector.load %arg7[%c0_17, %c0_18] : memref<1x128xf32, #tpu.memory_space<vmem>>, vector<1x128xf32>
    %47 = arith.truncf %44 : vector<16x256xf32> to vector<16x256xbf16>
    %cst_19 = arith.constant dense<0.000000e+00> : vector<16x128xf32>
    %48 = tpu.matmul %47, %45, %cst_19 {dimension_numbers = #tpu.dot_dimension_numbers<[1], [0], [0], [1], [0, 0, 1, 1], [], []>} : vector<16x256xbf16>, vector<256x128xbf16>, vector<16x128xf32> -> vector<16x128xf32>
    %49 = vector.broadcast %46 : vector<1x128xf32> to vector<16x128xf32>
    %50 = arith.addf %48, %49 : vector<16x128xf32>
    %cst_20 = arith.constant dense<0.000000e+00> : vector<16xf32>
    %51 = vector.multi_reduction <add>, %50, %cst_20 [1] : vector<16x128xf32> to vector<16xf32>
    %52 = vector.shape_cast %51 : vector<16xf32> to vector<16x1xf32>
    %53 = vector.extract_strided_slice %52 {offsets = [0, 0], sizes = [8, 1], strides = [1, 1]} : vector<16x1xf32> to vector<8x1xf32>
    %54 = vector.extract_strided_slice %52 {offsets = [8, 0], sizes = [8, 1], strides = [1, 1]} : vector<16x1xf32> to vector<8x1xf32>
    %55 = arith.addf %53, %54 : vector<8x1xf32>
    %cst_21 = arith.constant 3.906250e-03 : f32
    %56 = vector.broadcast %cst_21 : f32 to vector<8x1xf32>
    %57 = arith.mulf %55, %56 : vector<8x1xf32>
    %58 = tpu.concatenate %57, %57 in 0 : vector<8x1xf32>, vector<8x1xf32> -> vector<16x1xf32>
    %59 = vector.broadcast %58 : vector<16x1xf32> to vector<16x128xf32>
    %60 = arith.subf %50, %59 : vector<16x128xf32>
    %61 = arith.mulf %60, %60 : vector<16x128xf32>
    %cst_22 = arith.constant dense<0.000000e+00> : vector<16xf32>
    %62 = vector.multi_reduction <add>, %61, %cst_22 [1] : vector<16x128xf32> to vector<16xf32>
    %63 = vector.shape_cast %62 : vector<16xf32> to vector<16x1xf32>
    %64 = vector.extract_strided_slice %63 {offsets = [0, 0], sizes = [8, 1], strides = [1, 1]} : vector<16x1xf32> to vector<8x1xf32>
    %65 = vector.extract_strided_slice %63 {offsets = [8, 0], sizes = [8, 1], strides = [1, 1]} : vector<16x1xf32> to vector<8x1xf32>
    %66 = arith.addf %64, %65 : vector<8x1xf32>
    %cst_23 = arith.constant 3.906250e-03 : f32
    %67 = vector.broadcast %cst_23 : f32 to vector<8x1xf32>
    %68 = arith.mulf %66, %67 : vector<8x1xf32>
    %69 = vector.extract_strided_slice %3 {offsets = [0, 2], sizes = [8, 1], strides = [1, 1]} : vector<8x10xf32> to vector<8x1xf32>
    %70 = vector.extract_strided_slice %3 {offsets = [0, 3], sizes = [8, 1], strides = [1, 1]} : vector<8x10xf32> to vector<8x1xf32>
    %cst_24 = arith.constant 9.99999974E-6 : f32
    %71 = vector.broadcast %cst_24 : f32 to vector<8x1xf32>
    %72 = arith.addf %68, %71 : vector<8x1xf32>
    %73 = math.rsqrt %72 : vector<8x1xf32>
    %74 = arith.mulf %69, %73 : vector<8x1xf32>
    %75 = tpu.concatenate %74, %74 in 0 : vector<8x1xf32>, vector<8x1xf32> -> vector<16x1xf32>
    %76 = tpu.concatenate %70, %70 in 0 : vector<8x1xf32>, vector<8x1xf32> -> vector<16x1xf32>
    %77 = vector.broadcast %75 : vector<16x1xf32> to vector<16x128xf32>
    %78 = arith.mulf %60, %77 : vector<16x128xf32>
    %79 = vector.broadcast %76 : vector<16x1xf32> to vector<16x128xf32>
    %80 = arith.addf %78, %79 : vector<16x128xf32>
    %cst_25 = arith.constant 0.000000e+00 : f32
    %81 = vector.broadcast %cst_25 : f32 to vector<16x128xf32>
    %82 = arith.maximumf %80, %81 : vector<16x128xf32>
    %c0_26 = arith.constant 0 : index
    %c0_27 = arith.constant 0 : index
    %83 = vector.load %arg8[%c0_26, %c0_27] : memref<128x64xbf16, #tpu.memory_space<vmem>>, vector<128x64xbf16>
    %c0_28 = arith.constant 0 : index
    %c0_29 = arith.constant 0 : index
    %84 = vector.load %arg9[%c0_28, %c0_29] : memref<1x64xf32, #tpu.memory_space<vmem>>, vector<1x64xf32>
    %85 = arith.truncf %82 : vector<16x128xf32> to vector<16x128xbf16>
    %cst_30 = arith.constant dense<0.000000e+00> : vector<16x64xf32>
    %86 = tpu.matmul %85, %83, %cst_30 {dimension_numbers = #tpu.dot_dimension_numbers<[1], [0], [0], [1], [0, 0, 1, 1], [], []>} : vector<16x128xbf16>, vector<128x64xbf16>, vector<16x64xf32> -> vector<16x64xf32>
    %87 = vector.broadcast %84 : vector<1x64xf32> to vector<16x64xf32>
    %88 = arith.addf %86, %87 : vector<16x64xf32>
    %cst_31 = arith.constant dense<0.000000e+00> : vector<16xf32>
    %89 = vector.multi_reduction <add>, %88, %cst_31 [1] : vector<16x64xf32> to vector<16xf32>
    %90 = vector.shape_cast %89 : vector<16xf32> to vector<16x1xf32>
    %91 = vector.extract_strided_slice %90 {offsets = [0, 0], sizes = [8, 1], strides = [1, 1]} : vector<16x1xf32> to vector<8x1xf32>
    %92 = vector.extract_strided_slice %90 {offsets = [8, 0], sizes = [8, 1], strides = [1, 1]} : vector<16x1xf32> to vector<8x1xf32>
    %93 = arith.addf %91, %92 : vector<8x1xf32>
    %cst_32 = arith.constant 7.812500e-03 : f32
    %94 = vector.broadcast %cst_32 : f32 to vector<8x1xf32>
    %95 = arith.mulf %93, %94 : vector<8x1xf32>
    %96 = tpu.concatenate %95, %95 in 0 : vector<8x1xf32>, vector<8x1xf32> -> vector<16x1xf32>
    %97 = vector.broadcast %96 : vector<16x1xf32> to vector<16x64xf32>
    %98 = arith.subf %88, %97 : vector<16x64xf32>
    %99 = arith.mulf %98, %98 : vector<16x64xf32>
    %cst_33 = arith.constant dense<0.000000e+00> : vector<16xf32>
    %100 = vector.multi_reduction <add>, %99, %cst_33 [1] : vector<16x64xf32> to vector<16xf32>
    %101 = vector.shape_cast %100 : vector<16xf32> to vector<16x1xf32>
    %102 = vector.extract_strided_slice %101 {offsets = [0, 0], sizes = [8, 1], strides = [1, 1]} : vector<16x1xf32> to vector<8x1xf32>
    %103 = vector.extract_strided_slice %101 {offsets = [8, 0], sizes = [8, 1], strides = [1, 1]} : vector<16x1xf32> to vector<8x1xf32>
    %104 = arith.addf %102, %103 : vector<8x1xf32>
    %cst_34 = arith.constant 7.812500e-03 : f32
    %105 = vector.broadcast %cst_34 : f32 to vector<8x1xf32>
    %106 = arith.mulf %104, %105 : vector<8x1xf32>
    %107 = vector.extract_strided_slice %3 {offsets = [0, 4], sizes = [8, 1], strides = [1, 1]} : vector<8x10xf32> to vector<8x1xf32>
    %108 = vector.extract_strided_slice %3 {offsets = [0, 5], sizes = [8, 1], strides = [1, 1]} : vector<8x10xf32> to vector<8x1xf32>
    %cst_35 = arith.constant 9.99999974E-6 : f32
    %109 = vector.broadcast %cst_35 : f32 to vector<8x1xf32>
    %110 = arith.addf %106, %109 : vector<8x1xf32>
    %111 = math.rsqrt %110 : vector<8x1xf32>
    %112 = arith.mulf %107, %111 : vector<8x1xf32>
    %113 = tpu.concatenate %112, %112 in 0 : vector<8x1xf32>, vector<8x1xf32> -> vector<16x1xf32>
    %114 = tpu.concatenate %108, %108 in 0 : vector<8x1xf32>, vector<8x1xf32> -> vector<16x1xf32>
    %115 = vector.broadcast %113 : vector<16x1xf32> to vector<16x64xf32>
    %116 = arith.mulf %98, %115 : vector<16x64xf32>
    %117 = vector.broadcast %114 : vector<16x1xf32> to vector<16x64xf32>
    %118 = arith.addf %116, %117 : vector<16x64xf32>
    %cst_36 = arith.constant 0.000000e+00 : f32
    %119 = vector.broadcast %cst_36 : f32 to vector<16x64xf32>
    %120 = arith.maximumf %118, %119 : vector<16x64xf32>
    %c0_37 = arith.constant 0 : index
    %c0_38 = arith.constant 0 : index
    %121 = vector.load %arg10[%c0_37, %c0_38] : memref<64x32xbf16, #tpu.memory_space<vmem>>, vector<64x32xbf16>
    %c0_39 = arith.constant 0 : index
    %c0_40 = arith.constant 0 : index
    %122 = vector.load %arg11[%c0_39, %c0_40] : memref<1x32xf32, #tpu.memory_space<vmem>>, vector<1x32xf32>
    %123 = arith.truncf %120 : vector<16x64xf32> to vector<16x64xbf16>
    %cst_41 = arith.constant dense<0.000000e+00> : vector<16x32xf32>
    %124 = tpu.matmul %123, %121, %cst_41 {dimension_numbers = #tpu.dot_dimension_numbers<[1], [0], [0], [1], [0, 0, 1, 1], [], []>} : vector<16x64xbf16>, vector<64x32xbf16>, vector<16x32xf32> -> vector<16x32xf32>
    %125 = vector.broadcast %122 : vector<1x32xf32> to vector<16x32xf32>
    %126 = arith.addf %124, %125 : vector<16x32xf32>
    %cst_42 = arith.constant dense<0.000000e+00> : vector<16xf32>
    %127 = vector.multi_reduction <add>, %126, %cst_42 [1] : vector<16x32xf32> to vector<16xf32>
    %128 = vector.shape_cast %127 : vector<16xf32> to vector<16x1xf32>
    %129 = vector.extract_strided_slice %128 {offsets = [0, 0], sizes = [8, 1], strides = [1, 1]} : vector<16x1xf32> to vector<8x1xf32>
    %130 = vector.extract_strided_slice %128 {offsets = [8, 0], sizes = [8, 1], strides = [1, 1]} : vector<16x1xf32> to vector<8x1xf32>
    %131 = arith.addf %129, %130 : vector<8x1xf32>
    %cst_43 = arith.constant 1.562500e-02 : f32
    %132 = vector.broadcast %cst_43 : f32 to vector<8x1xf32>
    %133 = arith.mulf %131, %132 : vector<8x1xf32>
    %134 = tpu.concatenate %133, %133 in 0 : vector<8x1xf32>, vector<8x1xf32> -> vector<16x1xf32>
    %135 = vector.broadcast %134 : vector<16x1xf32> to vector<16x32xf32>
    %136 = arith.subf %126, %135 : vector<16x32xf32>
    %137 = arith.mulf %136, %136 : vector<16x32xf32>
    %cst_44 = arith.constant dense<0.000000e+00> : vector<16xf32>
    %138 = vector.multi_reduction <add>, %137, %cst_44 [1] : vector<16x32xf32> to vector<16xf32>
    %139 = vector.shape_cast %138 : vector<16xf32> to vector<16x1xf32>
    %140 = vector.extract_strided_slice %139 {offsets = [0, 0], sizes = [8, 1], strides = [1, 1]} : vector<16x1xf32> to vector<8x1xf32>
    %141 = vector.extract_strided_slice %139 {offsets = [8, 0], sizes = [8, 1], strides = [1, 1]} : vector<16x1xf32> to vector<8x1xf32>
    %142 = arith.addf %140, %141 : vector<8x1xf32>
    %cst_45 = arith.constant 1.562500e-02 : f32
    %143 = vector.broadcast %cst_45 : f32 to vector<8x1xf32>
    %144 = arith.mulf %142, %143 : vector<8x1xf32>
    %145 = vector.extract_strided_slice %3 {offsets = [0, 6], sizes = [8, 1], strides = [1, 1]} : vector<8x10xf32> to vector<8x1xf32>
    %146 = vector.extract_strided_slice %3 {offsets = [0, 7], sizes = [8, 1], strides = [1, 1]} : vector<8x10xf32> to vector<8x1xf32>
    %cst_46 = arith.constant 9.99999974E-6 : f32
    %147 = vector.broadcast %cst_46 : f32 to vector<8x1xf32>
    %148 = arith.addf %144, %147 : vector<8x1xf32>
    %149 = math.rsqrt %148 : vector<8x1xf32>
    %150 = arith.mulf %145, %149 : vector<8x1xf32>
    %151 = tpu.concatenate %150, %150 in 0 : vector<8x1xf32>, vector<8x1xf32> -> vector<16x1xf32>
    %152 = tpu.concatenate %146, %146 in 0 : vector<8x1xf32>, vector<8x1xf32> -> vector<16x1xf32>
    %153 = vector.broadcast %151 : vector<16x1xf32> to vector<16x32xf32>
    %154 = arith.mulf %136, %153 : vector<16x32xf32>
    %155 = vector.broadcast %152 : vector<16x1xf32> to vector<16x32xf32>
    %156 = arith.addf %154, %155 : vector<16x32xf32>
    %cst_47 = arith.constant 0.000000e+00 : f32
    %157 = vector.broadcast %cst_47 : f32 to vector<16x32xf32>
    %158 = arith.maximumf %156, %157 : vector<16x32xf32>
    %c0_48 = arith.constant 0 : index
    %c0_49 = arith.constant 0 : index
    %159 = vector.load %arg12[%c0_48, %c0_49] : memref<32x4xbf16, #tpu.memory_space<vmem>>, vector<32x4xbf16>
    %c0_50 = arith.constant 0 : index
    %c0_51 = arith.constant 0 : index
    %160 = vector.load %arg13[%c0_50, %c0_51] : memref<1x4xf32, #tpu.memory_space<vmem>>, vector<1x4xf32>
    %161 = arith.truncf %158 : vector<16x32xf32> to vector<16x32xbf16>
    %cst_52 = arith.constant dense<0.000000e+00> : vector<16x4xf32>
    %162 = tpu.matmul %161, %159, %cst_52 {dimension_numbers = #tpu.dot_dimension_numbers<[1], [0], [0], [1], [0, 0, 1, 1], [], []>} : vector<16x32xbf16>, vector<32x4xbf16>, vector<16x4xf32> -> vector<16x4xf32>
    %163 = vector.broadcast %160 : vector<1x4xf32> to vector<16x4xf32>
    %164 = arith.addf %162, %163 : vector<16x4xf32>
    %cst_53 = arith.constant dense<0.000000e+00> : vector<16xf32>
    %165 = vector.multi_reduction <add>, %164, %cst_53 [1] : vector<16x4xf32> to vector<16xf32>
    %166 = vector.shape_cast %165 : vector<16xf32> to vector<16x1xf32>
    %167 = vector.extract_strided_slice %166 {offsets = [0, 0], sizes = [8, 1], strides = [1, 1]} : vector<16x1xf32> to vector<8x1xf32>
    %168 = vector.extract_strided_slice %166 {offsets = [8, 0], sizes = [8, 1], strides = [1, 1]} : vector<16x1xf32> to vector<8x1xf32>
    %169 = arith.addf %167, %168 : vector<8x1xf32>
    %cst_54 = arith.constant 1.250000e-01 : f32
    %170 = vector.broadcast %cst_54 : f32 to vector<8x1xf32>
    %171 = arith.mulf %169, %170 : vector<8x1xf32>
    %172 = tpu.concatenate %171, %171 in 0 : vector<8x1xf32>, vector<8x1xf32> -> vector<16x1xf32>
    %173 = vector.broadcast %172 : vector<16x1xf32> to vector<16x4xf32>
    %174 = arith.subf %164, %173 : vector<16x4xf32>
    %175 = arith.mulf %174, %174 : vector<16x4xf32>
    %cst_55 = arith.constant dense<0.000000e+00> : vector<16xf32>
    %176 = vector.multi_reduction <add>, %175, %cst_55 [1] : vector<16x4xf32> to vector<16xf32>
    %177 = vector.shape_cast %176 : vector<16xf32> to vector<16x1xf32>
    %178 = vector.extract_strided_slice %177 {offsets = [0, 0], sizes = [8, 1], strides = [1, 1]} : vector<16x1xf32> to vector<8x1xf32>
    %179 = vector.extract_strided_slice %177 {offsets = [8, 0], sizes = [8, 1], strides = [1, 1]} : vector<16x1xf32> to vector<8x1xf32>
    %180 = arith.addf %178, %179 : vector<8x1xf32>
    %cst_56 = arith.constant 1.250000e-01 : f32
    %181 = vector.broadcast %cst_56 : f32 to vector<8x1xf32>
    %182 = arith.mulf %180, %181 : vector<8x1xf32>
    %183 = vector.extract_strided_slice %3 {offsets = [0, 8], sizes = [8, 1], strides = [1, 1]} : vector<8x10xf32> to vector<8x1xf32>
    %184 = vector.extract_strided_slice %3 {offsets = [0, 9], sizes = [8, 1], strides = [1, 1]} : vector<8x10xf32> to vector<8x1xf32>
    %cst_57 = arith.constant 9.99999974E-6 : f32
    %185 = vector.broadcast %cst_57 : f32 to vector<8x1xf32>
    %186 = arith.addf %182, %185 : vector<8x1xf32>
    %187 = math.rsqrt %186 : vector<8x1xf32>
    %188 = arith.mulf %183, %187 : vector<8x1xf32>
    %189 = tpu.concatenate %188, %188 in 0 : vector<8x1xf32>, vector<8x1xf32> -> vector<16x1xf32>
    %190 = tpu.concatenate %184, %184 in 0 : vector<8x1xf32>, vector<8x1xf32> -> vector<16x1xf32>
    %191 = vector.broadcast %189 : vector<16x1xf32> to vector<16x4xf32>
    %192 = arith.mulf %174, %191 : vector<16x4xf32>
    %193 = vector.broadcast %190 : vector<16x1xf32> to vector<16x4xf32>
    %194 = arith.addf %192, %193 : vector<16x4xf32>
    %cst_58 = arith.constant 0.000000e+00 : f32
    %195 = vector.broadcast %cst_58 : f32 to vector<16x4xf32>
    %196 = arith.maximumf %194, %195 : vector<16x4xf32>
    %c0_59 = arith.constant 0 : index
    %c0_60 = arith.constant 0 : index
    %197 = vector.load %arg14[%c0_59, %c0_60] : memref<8x10xf32, #tpu.memory_space<vmem>>, vector<8x10xf32>
    %c0_61 = arith.constant 0 : index
    %c0_62 = arith.constant 0 : index
    %198 = vector.load %arg15[%c0_61, %c0_62] : memref<4x256xbf16, #tpu.memory_space<vmem>>, vector<4x256xbf16>
    %199 = arith.truncf %196 : vector<16x4xf32> to vector<16x4xbf16>
    %cst_63 = arith.constant dense<0.000000e+00> : vector<16x256xf32>
    %200 = tpu.matmul %199, %198, %cst_63 {dimension_numbers = #tpu.dot_dimension_numbers<[1], [0], [0], [1], [0, 0, 1, 1], [], []>} : vector<16x4xbf16>, vector<4x256xbf16>, vector<16x256xf32> -> vector<16x256xf32>
    %201 = vector.extract_strided_slice %200 {offsets = [0, 0], sizes = [8, 256], strides = [1, 1]} : vector<16x256xf32> to vector<8x256xf32>
    %202 = vector.extract_strided_slice %1 {offsets = [0, 0], sizes = [1, 256], strides = [1, 1]} : vector<2x256xf32> to vector<1x256xf32>
    %203 = vector.broadcast %202 : vector<1x256xf32> to vector<8x256xf32>
    %204 = arith.addf %201, %203 : vector<8x256xf32>
    %205 = vector.extract_strided_slice %200 {offsets = [8, 0], sizes = [8, 256], strides = [1, 1]} : vector<16x256xf32> to vector<8x256xf32>
    %206 = vector.extract_strided_slice %1 {offsets = [1, 0], sizes = [1, 256], strides = [1, 1]} : vector<2x256xf32> to vector<1x256xf32>
    %207 = vector.broadcast %206 : vector<1x256xf32> to vector<8x256xf32>
    %208 = arith.addf %205, %207 : vector<8x256xf32>
    %209 = tpu.concatenate %204, %208 in 0 : vector<8x256xf32>, vector<8x256xf32> -> vector<16x256xf32>
    %cst_64 = arith.constant dense<0.000000e+00> : vector<16xf32>
    %210 = vector.multi_reduction <add>, %209, %cst_64 [1] : vector<16x256xf32> to vector<16xf32>
    %211 = vector.shape_cast %210 : vector<16xf32> to vector<16x1xf32>
    %212 = vector.extract_strided_slice %211 {offsets = [0, 0], sizes = [8, 1], strides = [1, 1]} : vector<16x1xf32> to vector<8x1xf32>
    %213 = vector.extract_strided_slice %211 {offsets = [8, 0], sizes = [8, 1], strides = [1, 1]} : vector<16x1xf32> to vector<8x1xf32>
    %214 = arith.addf %212, %213 : vector<8x1xf32>
    %cst_65 = arith.constant 0.001953125 : f32
    %215 = vector.broadcast %cst_65 : f32 to vector<8x1xf32>
    %216 = arith.mulf %214, %215 : vector<8x1xf32>
    %217 = tpu.concatenate %216, %216 in 0 : vector<8x1xf32>, vector<8x1xf32> -> vector<16x1xf32>
    %218 = vector.broadcast %217 : vector<16x1xf32> to vector<16x256xf32>
    %219 = arith.subf %209, %218 : vector<16x256xf32>
    %220 = arith.mulf %219, %219 : vector<16x256xf32>
    %cst_66 = arith.constant dense<0.000000e+00> : vector<16xf32>
    %221 = vector.multi_reduction <add>, %220, %cst_66 [1] : vector<16x256xf32> to vector<16xf32>
    %222 = vector.shape_cast %221 : vector<16xf32> to vector<16x1xf32>
    %223 = vector.extract_strided_slice %222 {offsets = [0, 0], sizes = [8, 1], strides = [1, 1]} : vector<16x1xf32> to vector<8x1xf32>
    %224 = vector.extract_strided_slice %222 {offsets = [8, 0], sizes = [8, 1], strides = [1, 1]} : vector<16x1xf32> to vector<8x1xf32>
    %225 = arith.addf %223, %224 : vector<8x1xf32>
    %cst_67 = arith.constant 0.001953125 : f32
    %226 = vector.broadcast %cst_67 : f32 to vector<8x1xf32>
    %227 = arith.mulf %225, %226 : vector<8x1xf32>
    %228 = vector.extract_strided_slice %197 {offsets = [0, 0], sizes = [8, 1], strides = [1, 1]} : vector<8x10xf32> to vector<8x1xf32>
    %229 = vector.extract_strided_slice %197 {offsets = [0, 1], sizes = [8, 1], strides = [1, 1]} : vector<8x10xf32> to vector<8x1xf32>
    %cst_68 = arith.constant 9.99999974E-6 : f32
    %230 = vector.broadcast %cst_68 : f32 to vector<8x1xf32>
    %231 = arith.addf %227, %230 : vector<8x1xf32>
    %232 = math.rsqrt %231 : vector<8x1xf32>
    %233 = arith.mulf %228, %232 : vector<8x1xf32>
    %234 = tpu.concatenate %233, %233 in 0 : vector<8x1xf32>, vector<8x1xf32> -> vector<16x1xf32>
    %235 = tpu.concatenate %229, %229 in 0 : vector<8x1xf32>, vector<8x1xf32> -> vector<16x1xf32>
    %236 = vector.broadcast %234 : vector<16x1xf32> to vector<16x256xf32>
    %237 = arith.mulf %219, %236 : vector<16x256xf32>
    %238 = vector.broadcast %235 : vector<16x1xf32> to vector<16x256xf32>
    %239 = arith.addf %237, %238 : vector<16x256xf32>
    %cst_69 = arith.constant 0.000000e+00 : f32
    %240 = vector.broadcast %cst_69 : f32 to vector<16x256xf32>
    %241 = arith.maximumf %239, %240 : vector<16x256xf32>
    %c0_70 = arith.constant 0 : index
    %c0_71 = arith.constant 0 : index
    %242 = vector.load %arg16[%c0_70, %c0_71] : memref<256x128xbf16, #tpu.memory_space<vmem>>, vector<256x128xbf16>
    %c0_72 = arith.constant 0 : index
    %c0_73 = arith.constant 0 : index
    %243 = vector.load %arg17[%c0_72, %c0_73] : memref<1x128xf32, #tpu.memory_space<vmem>>, vector<1x128xf32>
    %244 = arith.truncf %241 : vector<16x256xf32> to vector<16x256xbf16>
    %cst_74 = arith.constant dense<0.000000e+00> : vector<16x128xf32>
    %245 = tpu.matmul %244, %242, %cst_74 {dimension_numbers = #tpu.dot_dimension_numbers<[1], [0], [0], [1], [0, 0, 1, 1], [], []>} : vector<16x256xbf16>, vector<256x128xbf16>, vector<16x128xf32> -> vector<16x128xf32>
    %246 = vector.broadcast %243 : vector<1x128xf32> to vector<16x128xf32>
    %247 = arith.addf %245, %246 : vector<16x128xf32>
    %cst_75 = arith.constant dense<0.000000e+00> : vector<16xf32>
    %248 = vector.multi_reduction <add>, %247, %cst_75 [1] : vector<16x128xf32> to vector<16xf32>
    %249 = vector.shape_cast %248 : vector<16xf32> to vector<16x1xf32>
    %250 = vector.extract_strided_slice %249 {offsets = [0, 0], sizes = [8, 1], strides = [1, 1]} : vector<16x1xf32> to vector<8x1xf32>
    %251 = vector.extract_strided_slice %249 {offsets = [8, 0], sizes = [8, 1], strides = [1, 1]} : vector<16x1xf32> to vector<8x1xf32>
    %252 = arith.addf %250, %251 : vector<8x1xf32>
    %cst_76 = arith.constant 3.906250e-03 : f32
    %253 = vector.broadcast %cst_76 : f32 to vector<8x1xf32>
    %254 = arith.mulf %252, %253 : vector<8x1xf32>
    %255 = tpu.concatenate %254, %254 in 0 : vector<8x1xf32>, vector<8x1xf32> -> vector<16x1xf32>
    %256 = vector.broadcast %255 : vector<16x1xf32> to vector<16x128xf32>
    %257 = arith.subf %247, %256 : vector<16x128xf32>
    %258 = arith.mulf %257, %257 : vector<16x128xf32>
    %cst_77 = arith.constant dense<0.000000e+00> : vector<16xf32>
    %259 = vector.multi_reduction <add>, %258, %cst_77 [1] : vector<16x128xf32> to vector<16xf32>
    %260 = vector.shape_cast %259 : vector<16xf32> to vector<16x1xf32>
    %261 = vector.extract_strided_slice %260 {offsets = [0, 0], sizes = [8, 1], strides = [1, 1]} : vector<16x1xf32> to vector<8x1xf32>
    %262 = vector.extract_strided_slice %260 {offsets = [8, 0], sizes = [8, 1], strides = [1, 1]} : vector<16x1xf32> to vector<8x1xf32>
    %263 = arith.addf %261, %262 : vector<8x1xf32>
    %cst_78 = arith.constant 3.906250e-03 : f32
    %264 = vector.broadcast %cst_78 : f32 to vector<8x1xf32>
    %265 = arith.mulf %263, %264 : vector<8x1xf32>
    %266 = vector.extract_strided_slice %197 {offsets = [0, 2], sizes = [8, 1], strides = [1, 1]} : vector<8x10xf32> to vector<8x1xf32>
    %267 = vector.extract_strided_slice %197 {offsets = [0, 3], sizes = [8, 1], strides = [1, 1]} : vector<8x10xf32> to vector<8x1xf32>
    %cst_79 = arith.constant 9.99999974E-6 : f32
    %268 = vector.broadcast %cst_79 : f32 to vector<8x1xf32>
    %269 = arith.addf %265, %268 : vector<8x1xf32>
    %270 = math.rsqrt %269 : vector<8x1xf32>
    %271 = arith.mulf %266, %270 : vector<8x1xf32>
    %272 = tpu.concatenate %271, %271 in 0 : vector<8x1xf32>, vector<8x1xf32> -> vector<16x1xf32>
    %273 = tpu.concatenate %267, %267 in 0 : vector<8x1xf32>, vector<8x1xf32> -> vector<16x1xf32>
    %274 = vector.broadcast %272 : vector<16x1xf32> to vector<16x128xf32>
    %275 = arith.mulf %257, %274 : vector<16x128xf32>
    %276 = vector.broadcast %273 : vector<16x1xf32> to vector<16x128xf32>
    %277 = arith.addf %275, %276 : vector<16x128xf32>
    %cst_80 = arith.constant 0.000000e+00 : f32
    %278 = vector.broadcast %cst_80 : f32 to vector<16x128xf32>
    %279 = arith.maximumf %277, %278 : vector<16x128xf32>
    %c0_81 = arith.constant 0 : index
    %c0_82 = arith.constant 0 : index
    %280 = vector.load %arg18[%c0_81, %c0_82] : memref<128x64xbf16, #tpu.memory_space<vmem>>, vector<128x64xbf16>
    %c0_83 = arith.constant 0 : index
    %c0_84 = arith.constant 0 : index
    %281 = vector.load %arg19[%c0_83, %c0_84] : memref<1x64xf32, #tpu.memory_space<vmem>>, vector<1x64xf32>
    %282 = arith.truncf %279 : vector<16x128xf32> to vector<16x128xbf16>
    %cst_85 = arith.constant dense<0.000000e+00> : vector<16x64xf32>
    %283 = tpu.matmul %282, %280, %cst_85 {dimension_numbers = #tpu.dot_dimension_numbers<[1], [0], [0], [1], [0, 0, 1, 1], [], []>} : vector<16x128xbf16>, vector<128x64xbf16>, vector<16x64xf32> -> vector<16x64xf32>
    %284 = vector.broadcast %281 : vector<1x64xf32> to vector<16x64xf32>
    %285 = arith.addf %283, %284 : vector<16x64xf32>
    %cst_86 = arith.constant dense<0.000000e+00> : vector<16xf32>
    %286 = vector.multi_reduction <add>, %285, %cst_86 [1] : vector<16x64xf32> to vector<16xf32>
    %287 = vector.shape_cast %286 : vector<16xf32> to vector<16x1xf32>
    %288 = vector.extract_strided_slice %287 {offsets = [0, 0], sizes = [8, 1], strides = [1, 1]} : vector<16x1xf32> to vector<8x1xf32>
    %289 = vector.extract_strided_slice %287 {offsets = [8, 0], sizes = [8, 1], strides = [1, 1]} : vector<16x1xf32> to vector<8x1xf32>
    %290 = arith.addf %288, %289 : vector<8x1xf32>
    %cst_87 = arith.constant 7.812500e-03 : f32
    %291 = vector.broadcast %cst_87 : f32 to vector<8x1xf32>
    %292 = arith.mulf %290, %291 : vector<8x1xf32>
    %293 = tpu.concatenate %292, %292 in 0 : vector<8x1xf32>, vector<8x1xf32> -> vector<16x1xf32>
    %294 = vector.broadcast %293 : vector<16x1xf32> to vector<16x64xf32>
    %295 = arith.subf %285, %294 : vector<16x64xf32>
    %296 = arith.mulf %295, %295 : vector<16x64xf32>
    %cst_88 = arith.constant dense<0.000000e+00> : vector<16xf32>
    %297 = vector.multi_reduction <add>, %296, %cst_88 [1] : vector<16x64xf32> to vector<16xf32>
    %298 = vector.shape_cast %297 : vector<16xf32> to vector<16x1xf32>
    %299 = vector.extract_strided_slice %298 {offsets = [0, 0], sizes = [8, 1], strides = [1, 1]} : vector<16x1xf32> to vector<8x1xf32>
    %300 = vector.extract_strided_slice %298 {offsets = [8, 0], sizes = [8, 1], strides = [1, 1]} : vector<16x1xf32> to vector<8x1xf32>
    %301 = arith.addf %299, %300 : vector<8x1xf32>
    %cst_89 = arith.constant 7.812500e-03 : f32
    %302 = vector.broadcast %cst_89 : f32 to vector<8x1xf32>
    %303 = arith.mulf %301, %302 : vector<8x1xf32>
    %304 = vector.extract_strided_slice %197 {offsets = [0, 4], sizes = [8, 1], strides = [1, 1]} : vector<8x10xf32> to vector<8x1xf32>
    %305 = vector.extract_strided_slice %197 {offsets = [0, 5], sizes = [8, 1], strides = [1, 1]} : vector<8x10xf32> to vector<8x1xf32>
    %cst_90 = arith.constant 9.99999974E-6 : f32
    %306 = vector.broadcast %cst_90 : f32 to vector<8x1xf32>
    %307 = arith.addf %303, %306 : vector<8x1xf32>
    %308 = math.rsqrt %307 : vector<8x1xf32>
    %309 = arith.mulf %304, %308 : vector<8x1xf32>
    %310 = tpu.concatenate %309, %309 in 0 : vector<8x1xf32>, vector<8x1xf32> -> vector<16x1xf32>
    %311 = tpu.concatenate %305, %305 in 0 : vector<8x1xf32>, vector<8x1xf32> -> vector<16x1xf32>
    %312 = vector.broadcast %310 : vector<16x1xf32> to vector<16x64xf32>
    %313 = arith.mulf %295, %312 : vector<16x64xf32>
    %314 = vector.broadcast %311 : vector<16x1xf32> to vector<16x64xf32>
    %315 = arith.addf %313, %314 : vector<16x64xf32>
    %cst_91 = arith.constant 0.000000e+00 : f32
    %316 = vector.broadcast %cst_91 : f32 to vector<16x64xf32>
    %317 = arith.maximumf %315, %316 : vector<16x64xf32>
    %c0_92 = arith.constant 0 : index
    %c0_93 = arith.constant 0 : index
    %318 = vector.load %arg20[%c0_92, %c0_93] : memref<64x32xbf16, #tpu.memory_space<vmem>>, vector<64x32xbf16>
    %c0_94 = arith.constant 0 : index
    %c0_95 = arith.constant 0 : index
    %319 = vector.load %arg21[%c0_94, %c0_95] : memref<1x32xf32, #tpu.memory_space<vmem>>, vector<1x32xf32>
    %320 = arith.truncf %317 : vector<16x64xf32> to vector<16x64xbf16>
    %cst_96 = arith.constant dense<0.000000e+00> : vector<16x32xf32>
    %321 = tpu.matmul %320, %318, %cst_96 {dimension_numbers = #tpu.dot_dimension_numbers<[1], [0], [0], [1], [0, 0, 1, 1], [], []>} : vector<16x64xbf16>, vector<64x32xbf16>, vector<16x32xf32> -> vector<16x32xf32>
    %322 = vector.broadcast %319 : vector<1x32xf32> to vector<16x32xf32>
    %323 = arith.addf %321, %322 : vector<16x32xf32>
    %cst_97 = arith.constant dense<0.000000e+00> : vector<16xf32>
    %324 = vector.multi_reduction <add>, %323, %cst_97 [1] : vector<16x32xf32> to vector<16xf32>
    %325 = vector.shape_cast %324 : vector<16xf32> to vector<16x1xf32>
    %326 = vector.extract_strided_slice %325 {offsets = [0, 0], sizes = [8, 1], strides = [1, 1]} : vector<16x1xf32> to vector<8x1xf32>
    %327 = vector.extract_strided_slice %325 {offsets = [8, 0], sizes = [8, 1], strides = [1, 1]} : vector<16x1xf32> to vector<8x1xf32>
    %328 = arith.addf %326, %327 : vector<8x1xf32>
    %cst_98 = arith.constant 1.562500e-02 : f32
    %329 = vector.broadcast %cst_98 : f32 to vector<8x1xf32>
    %330 = arith.mulf %328, %329 : vector<8x1xf32>
    %331 = tpu.concatenate %330, %330 in 0 : vector<8x1xf32>, vector<8x1xf32> -> vector<16x1xf32>
    %332 = vector.broadcast %331 : vector<16x1xf32> to vector<16x32xf32>
    %333 = arith.subf %323, %332 : vector<16x32xf32>
    %334 = arith.mulf %333, %333 : vector<16x32xf32>
    %cst_99 = arith.constant dense<0.000000e+00> : vector<16xf32>
    %335 = vector.multi_reduction <add>, %334, %cst_99 [1] : vector<16x32xf32> to vector<16xf32>
    %336 = vector.shape_cast %335 : vector<16xf32> to vector<16x1xf32>
    %337 = vector.extract_strided_slice %336 {offsets = [0, 0], sizes = [8, 1], strides = [1, 1]} : vector<16x1xf32> to vector<8x1xf32>
    %338 = vector.extract_strided_slice %336 {offsets = [8, 0], sizes = [8, 1], strides = [1, 1]} : vector<16x1xf32> to vector<8x1xf32>
    %339 = arith.addf %337, %338 : vector<8x1xf32>
    %cst_100 = arith.constant 1.562500e-02 : f32
    %340 = vector.broadcast %cst_100 : f32 to vector<8x1xf32>
    %341 = arith.mulf %339, %340 : vector<8x1xf32>
    %342 = vector.extract_strided_slice %197 {offsets = [0, 6], sizes = [8, 1], strides = [1, 1]} : vector<8x10xf32> to vector<8x1xf32>
    %343 = vector.extract_strided_slice %197 {offsets = [0, 7], sizes = [8, 1], strides = [1, 1]} : vector<8x10xf32> to vector<8x1xf32>
    %cst_101 = arith.constant 9.99999974E-6 : f32
    %344 = vector.broadcast %cst_101 : f32 to vector<8x1xf32>
    %345 = arith.addf %341, %344 : vector<8x1xf32>
    %346 = math.rsqrt %345 : vector<8x1xf32>
    %347 = arith.mulf %342, %346 : vector<8x1xf32>
    %348 = tpu.concatenate %347, %347 in 0 : vector<8x1xf32>, vector<8x1xf32> -> vector<16x1xf32>
    %349 = tpu.concatenate %343, %343 in 0 : vector<8x1xf32>, vector<8x1xf32> -> vector<16x1xf32>
    %350 = vector.broadcast %348 : vector<16x1xf32> to vector<16x32xf32>
    %351 = arith.mulf %333, %350 : vector<16x32xf32>
    %352 = vector.broadcast %349 : vector<16x1xf32> to vector<16x32xf32>
    %353 = arith.addf %351, %352 : vector<16x32xf32>
    %cst_102 = arith.constant 0.000000e+00 : f32
    %354 = vector.broadcast %cst_102 : f32 to vector<16x32xf32>
    %355 = arith.maximumf %353, %354 : vector<16x32xf32>
    %c0_103 = arith.constant 0 : index
    %c0_104 = arith.constant 0 : index
    %356 = vector.load %arg22[%c0_103, %c0_104] : memref<32x4xbf16, #tpu.memory_space<vmem>>, vector<32x4xbf16>
    %c0_105 = arith.constant 0 : index
    %c0_106 = arith.constant 0 : index
    %357 = vector.load %arg23[%c0_105, %c0_106] : memref<1x4xf32, #tpu.memory_space<vmem>>, vector<1x4xf32>
    %358 = arith.truncf %355 : vector<16x32xf32> to vector<16x32xbf16>
    %cst_107 = arith.constant dense<0.000000e+00> : vector<16x4xf32>
    %359 = tpu.matmul %358, %356, %cst_107 {dimension_numbers = #tpu.dot_dimension_numbers<[1], [0], [0], [1], [0, 0, 1, 1], [], []>} : vector<16x32xbf16>, vector<32x4xbf16>, vector<16x4xf32> -> vector<16x4xf32>
    %360 = vector.broadcast %357 : vector<1x4xf32> to vector<16x4xf32>
    %361 = arith.addf %359, %360 : vector<16x4xf32>
    %cst_108 = arith.constant dense<0.000000e+00> : vector<16xf32>
    %362 = vector.multi_reduction <add>, %361, %cst_108 [1] : vector<16x4xf32> to vector<16xf32>
    %363 = vector.shape_cast %362 : vector<16xf32> to vector<16x1xf32>
    %364 = vector.extract_strided_slice %363 {offsets = [0, 0], sizes = [8, 1], strides = [1, 1]} : vector<16x1xf32> to vector<8x1xf32>
    %365 = vector.extract_strided_slice %363 {offsets = [8, 0], sizes = [8, 1], strides = [1, 1]} : vector<16x1xf32> to vector<8x1xf32>
    %366 = arith.addf %364, %365 : vector<8x1xf32>
    %cst_109 = arith.constant 1.250000e-01 : f32
    %367 = vector.broadcast %cst_109 : f32 to vector<8x1xf32>
    %368 = arith.mulf %366, %367 : vector<8x1xf32>
    %369 = tpu.concatenate %368, %368 in 0 : vector<8x1xf32>, vector<8x1xf32> -> vector<16x1xf32>
    %370 = vector.broadcast %369 : vector<16x1xf32> to vector<16x4xf32>
    %371 = arith.subf %361, %370 : vector<16x4xf32>
    %372 = arith.mulf %371, %371 : vector<16x4xf32>
    %cst_110 = arith.constant dense<0.000000e+00> : vector<16xf32>
    %373 = vector.multi_reduction <add>, %372, %cst_110 [1] : vector<16x4xf32> to vector<16xf32>
    %374 = vector.shape_cast %373 : vector<16xf32> to vector<16x1xf32>
    %375 = vector.extract_strided_slice %374 {offsets = [0, 0], sizes = [8, 1], strides = [1, 1]} : vector<16x1xf32> to vector<8x1xf32>
    %376 = vector.extract_strided_slice %374 {offsets = [8, 0], sizes = [8, 1], strides = [1, 1]} : vector<16x1xf32> to vector<8x1xf32>
    %377 = arith.addf %375, %376 : vector<8x1xf32>
    %cst_111 = arith.constant 1.250000e-01 : f32
    %378 = vector.broadcast %cst_111 : f32 to vector<8x1xf32>
    %379 = arith.mulf %377, %378 : vector<8x1xf32>
    %380 = vector.extract_strided_slice %197 {offsets = [0, 8], sizes = [8, 1], strides = [1, 1]} : vector<8x10xf32> to vector<8x1xf32>
    %381 = vector.extract_strided_slice %197 {offsets = [0, 9], sizes = [8, 1], strides = [1, 1]} : vector<8x10xf32> to vector<8x1xf32>
    %cst_112 = arith.constant 9.99999974E-6 : f32
    %382 = vector.broadcast %cst_112 : f32 to vector<8x1xf32>
    %383 = arith.addf %379, %382 : vector<8x1xf32>
    %384 = math.rsqrt %383 : vector<8x1xf32>
    %385 = arith.mulf %380, %384 : vector<8x1xf32>
    %386 = tpu.concatenate %385, %385 in 0 : vector<8x1xf32>, vector<8x1xf32> -> vector<16x1xf32>
    %387 = tpu.concatenate %381, %381 in 0 : vector<8x1xf32>, vector<8x1xf32> -> vector<16x1xf32>
    %388 = vector.broadcast %386 : vector<16x1xf32> to vector<16x4xf32>
    %389 = arith.mulf %371, %388 : vector<16x4xf32>
    %390 = vector.broadcast %387 : vector<16x1xf32> to vector<16x4xf32>
    %391 = arith.addf %389, %390 : vector<16x4xf32>
    %cst_113 = arith.constant 0.000000e+00 : f32
    %392 = vector.broadcast %cst_113 : f32 to vector<16x4xf32>
    %393 = arith.maximumf %391, %392 : vector<16x4xf32>
    %394 = vector.extract_strided_slice %393 {offsets = [0, 0], sizes = [8, 4], strides = [1, 1]} : vector<16x4xf32> to vector<8x4xf32>
    %c0_114 = arith.constant 0 : index
    %c0_115 = arith.constant 0 : index
    %c0_116 = arith.constant 0 : index
    %395 = vector.load %arg24[%c0_114, %c0_115, %c0_116] : memref<2x8x4xf32, #tpu.memory_space<vmem>>, vector<1x8x4xf32>
    %396 = vector.shape_cast %395 : vector<1x8x4xf32> to vector<8x4xf32>
    %397 = vector.shape_cast %394 : vector<8x4xf32> to vector<1x8x4xf32>
    tpu.vector_store %arg24[%c0_114, %c0_115, %c0_116], %397 {strides = array<i32>} : memref<2x8x4xf32, #tpu.memory_space<vmem>>, vector<1x8x4xf32>,
    %398 = vector.extract_strided_slice %393 {offsets = [8, 0], sizes = [8, 4], strides = [1, 1]} : vector<16x4xf32> to vector<8x4xf32>
    %c1 = arith.constant 1 : index
    %c0_117 = arith.constant 0 : index
    %c0_118 = arith.constant 0 : index
    %399 = vector.load %arg24[%c1, %c0_117, %c0_118] : memref<2x8x4xf32, #tpu.memory_space<vmem>>, vector<1x8x4xf32>
    %400 = vector.shape_cast %399 : vector<1x8x4xf32> to vector<8x4xf32>
    %401 = vector.shape_cast %398 : vector<8x4xf32> to vector<1x8x4xf32>
    tpu.vector_store %arg24[%c1, %c0_117, %c0_118], %401 {strides = array<i32>} : memref<2x8x4xf32, #tpu.memory_space<vmem>>, vector<1x8x4xf32>,
    return
  }
  func.func @transform_0(%arg0: i32) -> (i32, i32) {
    %c0_i32 = arith.constant 0 : i32
    %c0_i32_0 = arith.constant 0 : i32
    %c0_i32_1 = arith.constant 0 : i32
    return %c0_i32, %c0_i32_0 : i32, i32
  }
  func.func @transform_1(%arg0: i32) -> (i32, i32) {
    %c0_i32 = arith.constant 0 : i32
    %c0_i32_0 = arith.constant 0 : i32
    %c0_i32_1 = arith.constant 0 : i32
    return %c0_i32, %c0_i32_0 : i32, i32
  }
  func.func @transform_2(%arg0: i32) -> (i32, i32) {
    %c0_i32 = arith.constant 0 : i32
    %c0_i32_0 = arith.constant 0 : i32
    return %arg0, %c0_i32 : i32, i32
  }
  func.func @transform_3(%arg0: i32) -> (i32, i32) {
    %c0_i32 = arith.constant 0 : i32
    %c0_i32_0 = arith.constant 0 : i32
    return %arg0, %c0_i32 : i32, i32
  }
  func.func @transform_4(%arg0: i32) -> (i32, i32) {
    %c0_i32 = arith.constant 0 : i32
    %c0_i32_0 = arith.constant 0 : i32
    %c0_i32_1 = arith.constant 0 : i32
    return %c0_i32, %c0_i32_0 : i32, i32
  }
  func.func @transform_5(%arg0: i32) -> (i32, i32) {
    %c0_i32 = arith.constant 0 : i32
    %c0_i32_0 = arith.constant 0 : i32
    %c0_i32_1 = arith.constant 0 : i32
    return %c0_i32, %c0_i32_0 : i32, i32
  }
  func.func @transform_6(%arg0: i32) -> (i32, i32) {
    %c0_i32 = arith.constant 0 : i32
    %c0_i32_0 = arith.constant 0 : i32
    %c0_i32_1 = arith.constant 0 : i32
    return %c0_i32, %c0_i32_0 : i32, i32
  }
  func.func @transform_7(%arg0: i32) -> (i32, i32) {
    %c0_i32 = arith.constant 0 : i32
    %c0_i32_0 = arith.constant 0 : i32
    %c0_i32_1 = arith.constant 0 : i32
    return %c0_i32, %c0_i32_0 : i32, i32
  }
  func.func @transform_8(%arg0: i32) -> (i32, i32) {
    %c0_i32 = arith.constant 0 : i32
    %c0_i32_0 = arith.constant 0 : i32
    %c0_i32_1 = arith.constant 0 : i32
    return %c0_i32, %c0_i32_0 : i32, i32
  }
  func.func @transform_9(%arg0: i32) -> (i32, i32) {
    %c0_i32 = arith.constant 0 : i32
    %c0_i32_0 = arith.constant 0 : i32
    %c0_i32_1 = arith.constant 0 : i32
    return %c0_i32, %c0_i32_0 : i32, i32
  }
  func.func @transform_10(%arg0: i32) -> (i32, i32) {
    %c0_i32 = arith.constant 0 : i32
    %c0_i32_0 = arith.constant 0 : i32
    %c0_i32_1 = arith.constant 0 : i32
    return %c0_i32, %c0_i32_0 : i32, i32
  }
  func.func @transform_11(%arg0: i32) -> (i32, i32) {
    %c0_i32 = arith.constant 0 : i32
    %c0_i32_0 = arith.constant 0 : i32
    %c0_i32_1 = arith.constant 0 : i32
    return %c0_i32, %c0_i32_0 : i32, i32
  }
  func.func @transform_12(%arg0: i32) -> (i32, i32) {
    %c0_i32 = arith.constant 0 : i32
    %c0_i32_0 = arith.constant 0 : i32
    %c0_i32_1 = arith.constant 0 : i32
    return %c0_i32, %c0_i32_0 : i32, i32
  }
  func.func @transform_13(%arg0: i32) -> (i32, i32) {
    %c0_i32 = arith.constant 0 : i32
    %c0_i32_0 = arith.constant 0 : i32
    return %arg0, %c0_i32 : i32, i32
  }
  func.func @transform_14(%arg0: i32) -> (i32, i32) {
    %c0_i32 = arith.constant 0 : i32
    %c0_i32_0 = arith.constant 0 : i32
    %c0_i32_1 = arith.constant 0 : i32
    return %c0_i32, %c0_i32_0 : i32, i32
  }
  func.func @transform_15(%arg0: i32) -> (i32, i32) {
    %c0_i32 = arith.constant 0 : i32
    %c0_i32_0 = arith.constant 0 : i32
    %c0_i32_1 = arith.constant 0 : i32
    return %c0_i32, %c0_i32_0 : i32, i32
  }
  func.func @transform_16(%arg0: i32) -> (i32, i32) {
    %c0_i32 = arith.constant 0 : i32
    %c0_i32_0 = arith.constant 0 : i32
    %c0_i32_1 = arith.constant 0 : i32
    return %c0_i32, %c0_i32_0 : i32, i32
  }
  func.func @transform_17(%arg0: i32) -> (i32, i32) {
    %c0_i32 = arith.constant 0 : i32
    %c0_i32_0 = arith.constant 0 : i32
    %c0_i32_1 = arith.constant 0 : i32
    return %c0_i32, %c0_i32_0 : i32, i32
  }
  func.func @transform_18(%arg0: i32) -> (i32, i32) {
    %c0_i32 = arith.constant 0 : i32
    %c0_i32_0 = arith.constant 0 : i32
    %c0_i32_1 = arith.constant 0 : i32
    return %c0_i32, %c0_i32_0 : i32, i32
  }
  func.func @transform_19(%arg0: i32) -> (i32, i32) {
    %c0_i32 = arith.constant 0 : i32
    %c0_i32_0 = arith.constant 0 : i32
    %c0_i32_1 = arith.constant 0 : i32
    return %c0_i32, %c0_i32_0 : i32, i32
  }
  func.func @transform_20(%arg0: i32) -> (i32, i32) {
    %c0_i32 = arith.constant 0 : i32
    %c0_i32_0 = arith.constant 0 : i32
    %c0_i32_1 = arith.constant 0 : i32
    return %c0_i32, %c0_i32_0 : i32, i32
  }
  func.func @transform_21(%arg0: i32) -> (i32, i32) {
    %c0_i32 = arith.constant 0 : i32
    %c0_i32_0 = arith.constant 0 : i32
    %c0_i32_1 = arith.constant 0 : i32
    return %c0_i32, %c0_i32_0 : i32, i32
  }
  func.func @transform_22(%arg0: i32) -> (i32, i32) {
    %c0_i32 = arith.constant 0 : i32
    %c0_i32_0 = arith.constant 0 : i32
    %c0_i32_1 = arith.constant 0 : i32
    return %c0_i32, %c0_i32_0 : i32, i32
  }
  func.func @transform_23(%arg0: i32) -> (i32, i32, i32) {
    %c0_i32 = arith.constant 0 : i32
    %c0_i32_0 = arith.constant 0 : i32
    %c0_i32_1 = arith.constant 0 : i32
    return %c0_i32, %arg0, %c0_i32_0 : i32, i32, i32
  }
}

</mosaic_0001>

<bundles_post_ra>
// kernel: tpu_custom_call.1
= control target key start
LH: loop header
LB: loop body
LE: loop exit
PB: predicated region body
PF: predicated region fallthrough
CT: control target
= control target key end

     0   :  { %s4129_s0 = inlined_call_operand.hbm [shape: f32[2,256], index: 0, kind: input, shape index: {}]   ;;  %s4130_s1 = inlined_call_operand.hbm [shape: f32[2,256], index: 1, kind: input, shape index: {}]   ;;  %s4131_s2 = inlined_call_operand.vmem [shape: bf16[16,2], index: 2, kind: input, shape index: {}]   ;;  %s4132_s3 = inlined_call_operand.hbm [shape: f32[16,10], index: 3, kind: input, shape index: {}]   ;;  %s4133_s4 = inlined_call_operand.vmem [shape: bf16[2,256], index: 4, kind: input, shape index: {}]   ;;  %s4134_s5 = inlined_call_operand.vmem [shape: bf16[256,128], index: 5, kind: input, shape index: {}]   ;;  %s4135_s6 = inlined_call_operand.hbm [shape: f32[1,128], index: 6, kind: input, shape index: {}]   ;;  %s4136_s7 = inlined_call_operand.vmem [shape: bf16[128,64], index: 7, kind: input, shape index: {}]   ;;  %s4137_s8 = inlined_call_operand.hbm [shape: f32[1,64], index: 8, kind: input, shape index: {}]   ;;  %s4138_s9 = inlined_call_operand.vmem [shape: bf16[64,32], index: 9, kind: input, shape index: {}]   ;;  %s4139_s10 = inlined_call_operand.hbm [shape: f32[1,32], index: 10, kind: input, shape index: {}]   ;;  %s4140_s11 = inlined_call_operand.vmem [shape: bf16[32,4], index: 11, kind: input, shape index: {}]   ;;  %s4141_s12 = inlined_call_operand.hbm [shape: f32[1,4], index: 12, kind: input, shape index: {}]   ;;  %s4142_s13 = inlined_call_operand.vmem [shape: f32[16,10], index: 13, kind: input, shape index: {}]   ;;  %s4143_s14 = inlined_call_operand.vmem [shape: bf16[4,256], index: 14, kind: input, shape index: {}]   ;;  %s4144_s15 = inlined_call_operand.vmem [shape: bf16[256,128], index: 15, kind: input, shape index: {}]   ;;  %s4145_s16 = inlined_call_operand.vmem [shape: f32[1,128], index: 16, kind: input, shape index: {}]   ;;  %s4146_s17 = inlined_call_operand.vmem [shape: bf16[128,64], index: 17, kind: input, shape index: {}]   ;;  %s4147_s18 = inlined_call_operand.vmem [shape: f32[1,64], index: 18, kind: input, shape index: {}]   ;;  %s4148_s19 = inlined_call_operand.vmem [shape: bf16[64,32], index: 19, kind: input, shape index: {}]   ;;  %s4149_s20 = inlined_call_operand.vmem [shape: f32[1,32], index: 20, kind: input, shape index: {}]   ;;  %s4150_s21 = inlined_call_operand.vmem [shape: bf16[32,4], index: 21, kind: input, shape index: {}]   ;;  %s4151_s22 = inlined_call_operand.vmem [shape: f32[1,4], index: 22, kind: input, shape index: {}]   ;;  %s4152_s23 = inlined_call_operand.vmem [shape: f32[2,16,4], index: 23, kind: output, shape index: {}]  }
   0x1   :  { %4165 = sst [smem:[#allocation20_spill]] %s4129_s0 }
   0x2   :  { %4166 = sst [smem:[#allocation21_spill]] %s4130_s1 }
   0x3   :  { %4167 = sst [smem:[#allocation22_spill]] %s4131_s2 }
   0x4   :  { %4168 = sst [smem:[#allocation23_spill]] %s4132_s3 }
   0x5   :  { %4169 = sst [smem:[#allocation24_spill]] %s4133_s4 }
   0x6   :  { %4170 = sst [smem:[#allocation25_spill]] %s4134_s5 }
   0x7   :  { %4171 = sst [smem:[#allocation26_spill]] %s4135_s6 }
   0x8   :  { %4172 = sst [smem:[#allocation27_spill]] %s4136_s7 }
   0x9   :  { %4173 = sst [smem:[#allocation28_spill]] %s4145_s16 }
   0xa   :  { %4174 = sst [smem:[#allocation29_spill]] %s4146_s17 }
   0xb   :  { %4175 = sst [smem:[#allocation30_spill]] %s4147_s18 }
   0xc   :  { %4176 = sst [smem:[#allocation31_spill]] %s4148_s19 }
   0xd   :  { %4177 = sst [smem:[#allocation32_spill]] %s4149_s20 }
   0xe   :  { %4178 = sst [smem:[#allocation33_spill]] %s4150_s21 }
   0xf   :  { %4179 = sst [smem:[#allocation34_spill]] %s4151_s22 }
  0x10   :  { %4180 = sst [smem:[#allocation35_spill]] %s4152_s23 }
  0x11   :  { %28 = vsyncpa [#allocation3], 0 }
  0x12   :  { %29 = vsyncpa [#allocation5], 0 }
  0x13   :  { %30 = vsyncpa [#allocation9], 0 }
  0x14   :  { %31 = vsyncpa [#allocation12], 0  ;;  %s3461_s4 = smov 0   ;;  %s3463_s30 = smov 0  }
  0x15   :  { %s3465_s24 = smov 0   ;;  %s3467_s25 = smov 0  }
  0x16 LB: > { %s3321_s5 = smov [#allocation2]   ;;  %s3482_s26 = sadd.s32 4294967295, %s3319_s25   ;;  %s3319_s25 = sphi %s3467_s25, %s4219_s25   ;;  %s3315_s24 = sphi %s3465_s24, %s4218_s24   ;;  %s3311_s30 = sphi %s3463_s30, %s4217_s30   ;;  %s3307_s4 = sphi %s3461_s4, %s4216_s4  }
  0x17   : > { %s579_s1 = sshll.u32 %s3321_s5, 4  ;;  %p2582_p0 = scmp.ge.s32.totalorder %s3319_s25, 1  ;;  %s3487_s1 = int_to_ptr.vmem [resolvable:$true] %s579_s1 }
  0x18   : > { %p4163_p1 = scmp.eq.s32.totalorder %s3482_s26, 0  ;;  %p566_p2 = scmp.lt.s32.totalorder %s3319_s25, 3 }
  0x19   : > { %s3322_s6 = smov [#allocation4]   ;;  %s3323_s7 = smov [#allocation8]  }
  0x1a   : > { %p3489_p3 = pnand %p2582_p0, %p566_p2  ;;  %s590_s27 = sshll.u32 %s3322_s6, 4  ;;  %s3495_s27 = int_to_ptr.vmem [resolvable:$true] %s590_s27 }
  0x1b   : > { %s621_s28 = sshll.u32 %s3323_s7, 4  ;;  %s3324_s3 = smov [#allocation7]   ;;  %s3503_s28 = int_to_ptr.vmem [resolvable:$true] %s621_s28 }
  0x1c   : > { %s4181_s2 = scalar_select %p3489_p3, 1, 0 }
  0x1d   : > { %p2870_p4 = pneg %p3489_p3  ;;  %s3505_s0 = sshll.u32 %s3324_s3, 4  ;;  %s608_s0 = int_to_ptr.vmem [resolvable:$true] %s3505_s0 }
  0x1e   : > { %s4183_s22 = sld [smem:[#allocation20_spill]] }
  0x1f   : > { %p3499_p5 = pnand %p2870_p4, %p4163_p1 }
  0x21   : > { %p3515_p7 = pneg %p3499_p5 }
  0x24   : > { %s3067_s21 = scalar_lea.hbm %s4183_s22, 64 }
  0x25   : > { %p3068_p6 = scmp.ne.s32.totalorder %s4183_s22, %s3067_s21  ;;  %p3074_p10 = scmp.lt.u32.totalorder %s3067_s21, %s4183_s22 }
  0x27   : > { %p3070_p8 = pnand %p3515_p7, %p3068_p6 }
  0x29   : > { %p3071_p9 = pneg %p3070_p8 }
  0x2b   : > { %p3076_p11 = pnand %p3074_p10, %p3071_p9 }
  0x2d   : > { %3079 = shalt.err (!%p3076_p11)
}
  0x2e   : > { %s3080_s20 = scalar_lea.vmem %s3487_s1, 64  ;;  %p3088_p2 = scmp.lt.s32.totalorder %s3487_s1, %s3487_s1 }
  0x2f   : > { %p3081_p12 = scmp.ne.s32.totalorder %s3487_s1, %s3080_s20  ;;  %p3089_p4 = scmp.lt.s32.totalorder %s3080_s20, %s3080_s20 }
  0x31   : > { %p3083_p13 = pnand %p3081_p12, %p3515_p7  ;;  %p3090_p6 = por %p3089_p4, %p3088_p2 }
  0x33   : > { %p3084_p0 = pneg %p3083_p13 }
  0x35   : > { %p3091_p8 = pnand %p3090_p6, %p3084_p0 }
  0x37   : > { %3094 = shalt.err (!%p3091_p8)
}
  0x38   : > { %2873 = dma.hbm_to_vmem [thread:$0]  (!%p3499_p5), %s4183_s22, 64, %s3487_s1, [#allocation3]  }
  0x39   : > { %s4185_s6 = sld [smem:[#allocation21_spill]] }
  0x3f   : > { %s3095_s3 = scalar_lea.hbm %s4185_s6, 64 }
  0x40   : > { %p3096_p9 = scmp.ne.s32.totalorder %s4185_s6, %s3095_s3  ;;  %p3102_p12 = scmp.lt.u32.totalorder %s3095_s3, %s4185_s6 }
  0x42   : > { %p3098_p10 = pnand %p3096_p9, %p3515_p7 }
  0x44   : > { %p3099_p11 = pneg %p3098_p10 }
  0x46   : > { %p3104_p13 = pnand %p3102_p12, %p3099_p11 }
  0x48   : > { %3107 = shalt.err (!%p3104_p13)
}
  0x49   : > { %s3108_s1 = scalar_lea.vmem %s3495_s27, 64  ;;  %p3116_p6 = scmp.lt.s32.totalorder %s3495_s27, %s3495_s27 }
  0x4a   : > { %p3109_p0 = scmp.ne.s32.totalorder %s3495_s27, %s3108_s1  ;;  %p3117_p8 = scmp.lt.s32.totalorder %s3108_s1, %s3108_s1 }
  0x4c   : > { %p3111_p2 = pnand %p3109_p0, %p3515_p7  ;;  %p3118_p9 = por %p3117_p8, %p3116_p6 }
  0x4e   : > { %p3112_p4 = pneg %p3111_p2 }
  0x50   : > { %p3119_p10 = pnand %p3118_p9, %p3112_p4 }
  0x52   : > { %3122 = shalt.err (!%p3119_p10)
}
  0x53   : > { %2876 = dma.hbm_to_vmem [thread:$0]  (!%p3499_p5), %s4185_s6, 64, %s3495_s27, [#allocation5]  }
  0x54   : > { %s3123_s21 = scalar_lea.hbm %s4137_s8, 16 }
  0x55   : > { %p3124_p11 = scmp.ne.s32.totalorder %s4137_s8, %s3123_s21  ;;  %p3130_p0 = scmp.lt.u32.totalorder %s3123_s21, %s4137_s8 }
  0x57   : > { %p3126_p12 = pnand %p3124_p11, %p3515_p7 }
  0x59   : > { %p3127_p13 = pneg %p3126_p12 }
  0x5b   : > { %p3132_p2 = pnand %p3130_p0, %p3127_p13 }
  0x5d   : > { %3135 = shalt.err (!%p3132_p2)
}
  0x5e   : > { %s3136_s27 = scalar_lea.vmem %s3503_s28, 16  ;;  %s3143_s1 = scalar_lea.vmem %s3503_s28, 32 }
  0x5f   : > { %p3137_p4 = scmp.ne.s32.totalorder %s3503_s28, %s3136_s27  ;;  %p3144_p9 = scmp.lt.s32.totalorder %s3503_s28, %s3503_s28 }
  0x60   : > { %p3145_p10 = scmp.lt.s32.totalorder %s3143_s1, %s3136_s27 }
  0x61   : > { %p3139_p6 = pnand %p3137_p4, %p3515_p7 }
  0x62   : > { %p3146_p11 = por %p3145_p10, %p3144_p9 }
  0x63   : > { %p3140_p8 = pneg %p3139_p6 }
  0x65   : > { %p3147_p12 = pnand %p3146_p11, %p3140_p8 }
  0x67   : > { %3150 = shalt.err (!%p3147_p12)
}
  0x68   : > { %2882 = dma.hbm_to_vmem [thread:$0]  (!%p3499_p5), %s4137_s8, 16, %s3503_s28, [#allocation9]  }
  0x69   : > { %s3325_s18 = smov [#allocation10]   ;;  %s4186_s5 = sld [smem:[#allocation26_spill]] }
  0x6a   : > { %s635_s19 = sshll.u32 %s3325_s18, 4  ;;  %s636_s19 = int_to_ptr.vmem [resolvable:$true] %s635_s19 }
  0x6f   : > { %s3151_s3 = scalar_lea.hbm %s4186_s5, 16 }
  0x70   : > { %p3152_p13 = scmp.ne.s32.totalorder %s4186_s5, %s3151_s3  ;;  %p3158_p4 = scmp.lt.u32.totalorder %s3151_s3, %s4186_s5 }
  0x72   : > { %p3154_p0 = pnand %p3152_p13, %p3515_p7 }
  0x74   : > { %p3155_p2 = pneg %p3154_p0 }
  0x76   : > { %p3160_p6 = pnand %p3158_p4, %p3155_p2 }
  0x78   : > { %3163 = shalt.err (!%p3160_p6)
}
  0x79   : > { %s3164_s28 = scalar_lea.vmem %s608_s0, 16  ;;  %s3171_s16 = scalar_lea.vmem %s608_s0, 32 }
  0x7a   : > { %p3165_p8 = scmp.ne.s32.totalorder %s608_s0, %s3164_s28  ;;  %p3172_p11 = scmp.lt.s32.totalorder %s608_s0, %s608_s0 }
  0x7b   : > { %p3173_p12 = scmp.lt.s32.totalorder %s3171_s16, %s3164_s28 }
  0x7c   : > { %p3167_p9 = pnand %p3165_p8, %p3515_p7 }
  0x7d   : > { %p3174_p1 = por %p3173_p12, %p3172_p11 }
  0x7e   : > { %p3168_p10 = pneg %p3167_p9 }
  0x80   : > { %p3175_p3 = pnand %p3174_p1, %p3168_p10 }
  0x82   : > { %3178 = shalt.err (!%p3175_p3)
}
  0x83   : > { %2879 = dma.hbm_to_vmem [thread:$0]  (!%p3499_p5), %s4186_s5, 16, %s608_s0, [#allocation5]  }
  0x84   : > { %s3179_s23 = scalar_lea.hbm %s4139_s10, 16 }
  0x85   : > { %p3180_p13 = scmp.ne.s32.totalorder %s4139_s10, %s3179_s23  ;;  %p3186_p3 = scmp.lt.u32.totalorder %s3179_s23, %s4139_s10 }
  0x87   : > { %p3182_p0 = pnand %p3180_p13, %p3515_p7 }
  0x89   : > { %p3183_p1 = pneg %p3182_p0 }
  0x8b   : > { %p3188_p2 = pnand %p3186_p3, %p3183_p1 }
  0x8d   : > { %3191 = shalt.err (!%p3188_p2)
}
  0x8e   : > { %s3192_s28 = scalar_lea.vmem %s636_s19, 16  ;;  %s3199_s0 = scalar_lea.vmem %s636_s19, 32 }
  0x8f   : > { %p3193_p4 = scmp.ne.s32.totalorder %s636_s19, %s3192_s28  ;;  %p3200_p9 = scmp.lt.s32.totalorder %s636_s19, %s636_s19 }
  0x90   : > { %p3201_p10 = scmp.lt.s32.totalorder %s3199_s0, %s3192_s28 }
  0x91   : > { %p3195_p6 = pnand %p3193_p4, %p3515_p7 }
  0x92   : > { %p3202_p11 = por %p3201_p10, %p3200_p9 }
  0x93   : > { %p3196_p8 = pneg %p3195_p6 }
  0x95   : > { %p3203_p12 = pnand %p3202_p11, %p3196_p8 }
  0x97   : > { %3206 = shalt.err (!%p3203_p12)
}
  0x98   : > { %2885 = dma.hbm_to_vmem [thread:$0]  (!%p3499_p5), %s4139_s10, 16, %s636_s19, [#allocation9]  }
  0x99   : > { %s3326_s18 = smov [#allocation11]   ;;  %s3207_s3 = scalar_lea.hbm %s4141_s12, 16 }
  0x9a   : > { %s649_s6 = sshll.u32 %s3326_s18, 4  ;;  %p3208_p13 = scmp.ne.s32.totalorder %s4141_s12, %s3207_s3  ;;  %s650_s6 = int_to_ptr.vmem [resolvable:$true] %s649_s6 }
  0x9b   : > { %p3214_p3 = scmp.lt.u32.totalorder %s3207_s3, %s4141_s12 }
  0x9c   : > { %p3210_p0 = pnand %p3208_p13, %p3515_p7 }
  0x9e   : > { %p3211_p1 = pneg %p3210_p0 }
  0xa0   : > { %p3216_p2 = pnand %p3214_p3, %p3211_p1 }
  0xa2   : > { %3219 = shalt.err (!%p3216_p2)
}
  0xa3   : > { %s3220_s19 = scalar_lea.vmem %s650_s6, 16  ;;  %s3227_s0 = scalar_lea.vmem %s650_s6, 32 }
  0xa4   : > { %p3221_p4 = scmp.ne.s32.totalorder %s650_s6, %s3220_s19  ;;  %p3228_p9 = scmp.lt.s32.totalorder %s650_s6, %s650_s6 }
  0xa5   : > { %p3229_p10 = scmp.lt.s32.totalorder %s3227_s0, %s3220_s19 }
  0xa6   : > { %p3223_p6 = pnand %p3221_p4, %p3515_p7 }
  0xa7   : > { %p3230_p11 = por %p3229_p10, %p3228_p9 }
  0xa8   : > { %p3224_p8 = pneg %p3223_p6 }
  0xaa   : > { %p3231_p12 = pnand %p3230_p11, %p3224_p8 }
  0xac   : > { %3234 = shalt.err (!%p3231_p12)
}
  0xad   : > { %2888 = dma.hbm_to_vmem [thread:$0]  (!%p3499_p5), %s4141_s12, 16, %s650_s6, [#allocation12]  }
  0xae   : > { %s3639_s7 = sadd.s32 1, %s3319_s25   ;;  %s112_s29 = sadd.s32 1, %s3315_s24 }
  0xaf   : > { %s109_s18 = ssub.s32 %s3319_s25, %s3639_s7  ;;  %p119_p7 = scmp.ne.s32.totalorder %s3315_s24, %s3311_s30 }
  0xb0   : > { %p110_p13 = scmp.eq.s32.totalorder %s109_s18, 0  ;;  %p120_p0 = scmp.eq.s32.totalorder %s3319_s25, 0 }
  0xb1   : > { %p125_p1 = scmp.ne.s32.totalorder %s3311_s30, %s3307_s4  ;;  %p553_p3 = scmp.eq.s32.totalorder %s3482_s26, 1 }
  0xb2   : > { %s3651_s21 = scalar_select %p110_p13, %s3315_s24, %s112_s29  }
  0xb3   : > { %p121_p2 = por %p120_p0, %p119_p7  ;;  %p4187_p4 = scmp.eq.s32.totalorder %s3482_s26, 0 }
  0xb4   : > { %p3659_p5 = por %p553_p3, %p119_p7  ;;  %p2899_p8 = scmp.lt.s32.totalorder %s3319_s25, 2 }
  0xb5   : > { %p3655_p6 = por %p4187_p4, %p125_p1  ;;  %s694_s3 = sand.u32 1, %s3319_s25  }
  0xb6   : > { %s4189_s6 = scalar_select %p3659_p5, 1, 0 }
  0xb7   : > { %s696_s20 = sand.u32 1, %s3315_s24   ;;  %s2591_s1 = sshll.u32 %s3319_s25, 7 }
  0xb8   : > { %s2590_s27 = sshll.u32 %s696_s20, 3  ;;  %s4190_s19 = sld [smem:[#allocation23_spill]] }
  0xb9   : > { %s698_s16 = scalar_lea.vmem [#allocation6], %s2590_s27  ;;  %p3674_p9 = pnand %p2899_p8, %p121_p2 }
  0xba   : > { %s705_s17 = sshll.u32 %s698_s16, 4  ;;  %s695_s25 = scalar_lea.sflag [#allocation3], %s694_s3  ;;  %s3672_s17 = int_to_ptr.vmem [resolvable:$true] %s705_s17 }
  0xbb   : > { %p3237_p11 = pneg %p3674_p9 }
  0xbe   : > { %s3670_s0 = scalar_lea.hbm %s4190_s19, %s2591_s1  ;;  %s3240_s1 = scalar_lea.hbm %s4190_s19, 256 }
  0xbf   : > { %s3235_s18 = scalar_lea.hbm %s3670_s0, 128  ;;  %p3241_p13 = scmp.lt.u32.totalorder %s3670_s0, %s4190_s19 }
  0xc0   : > { %p3236_p10 = scmp.ne.s32.totalorder %s3670_s0, %s3235_s18  ;;  %p3242_p0 = scmp.lt.u32.totalorder %s3240_s1, %s3235_s18 }
  0xc1   : > { %p3244_p3 = scmp.lt.u32.totalorder %s3235_s18, %s3670_s0 }
  0xc2   : > { %p3238_p12 = pnand %p3237_p11, %p3236_p10  ;;  %p3243_p1 = por %p3242_p0, %p3241_p13 }
  0xc4   : > { %p3239_p7 = pneg %p3238_p12  ;;  %p3245_p2 = por %p3244_p3, %p3243_p1 }
  0xc6   : > { %p3246_p4 = pnand %p3245_p2, %p3239_p7 }
  0xc8   : > { %3249 = shalt.err (!%p3246_p4)
}
  0xc9   : > { %s3250_s3 = scalar_lea.vmem %s3672_s17, 128  ;;  %s3327_s16 = smov [#allocation6]  }
  0xca   : > { %p3251_p8 = scmp.ne.s32.totalorder %s3672_s17, %s3250_s3  ;;  %s3255_s20 = sshll.u32 %s3327_s16, 4  ;;  %s3256_s20 = int_to_ptr.vmem [resolvable:$false] %s3255_s20 }
  0xcb   : > { %s3257_s27 = scalar_lea.vmem %s3256_s20, 256  ;;  %p3258_p5 = scmp.lt.s32.totalorder %s3672_s17, %s3256_s20 }
  0xcc   : > { %p3253_p10 = pnand %p3251_p8, %p3237_p11  ;;  %p3259_p13 = scmp.lt.s32.totalorder %s3257_s27, %s3250_s3 }
  0xce   : > { %p3254_p12 = pneg %p3253_p10  ;;  %p3260_p0 = por %p3259_p13, %p3258_p5 }
  0xd0   : > { %p3261_p1 = pnand %p3260_p0, %p3254_p12 }
  0xd2   : > { %3264 = shalt.err (!%p3261_p1)
}
  0xd3   : > { %2892 = dma.hbm_to_vmem [thread:$0]  (!%p3674_p9), %s3670_s0, 128, %s3672_s17, %s695_s25  }
  0xd4   : > { %p4192_p7 = scmp.ne.s32.totalorder %s4181_s2, 0 }
  0xd5   : > { %p4193_p11 = scmp.eq.s32.totalorder (!%p4192_p7), %s3482_s26, 0 }
  0xd6   : > { %721 = sbr.rel (%p4192_p7) target bundleno = 8231 (0x2027), region = 112 }
  0xdd   : > { %3282 = dma.done.wait (%p4193_p11), [#allocation3], 64   ;;  %p4194_p3 = pmov %p4193_p11 }
  0xdf   : > { %3284 = vsyncadd (%p4194_p3), [#allocation3], 4294967232  ;;  %p4195_p2 = pmov %p4194_p3 }
  0xe1   : > { %3286 = dma.done.wait (%p4195_p2), [#allocation5], 64   ;;  %p4196_p5 = pmov %p4195_p2 }
  0xe2   : > { %s731_s0 = sand.u32 1, %s3482_s26   ;;  %s733_s17 = sand.u32 1, %s3311_s30  }
  0xe3   : > { %3288 = vsyncadd (%p4196_p5), [#allocation5], 4294967232  ;;  %s3717_s2 = sshll.u32 %s733_s17, 3  ;;  %s732_s29 = scalar_lea.sflag [#allocation3], %s731_s0 }
  0xe4   : > { %s735_s25 = scalar_lea.vmem [#allocation6], %s3717_s2 }
  0xe5   : > { %3290 = dma.done.wait (%p3655_p6), %s732_s29, 128  }
  0xe6   : > { %3292 = vsyncadd (%p3655_p6), %s732_s29, 4294967168  ;;  %p4197_p9 = pmov %p4195_p2 }
  0xe7   : > { %p4198_p4 = pmov %p4195_p2 }
  0xe8   : > { %3294 = dma.done.wait (%p4197_p9), [#allocation5], 16  }
  0xe9   : > { %3296 = vsyncadd (%p4198_p4), [#allocation5], 4294967280  ;;  %p4199_p8 = pmov %p4195_p2 }
  0xea   : > { %p4200_p10 = pmov %p4195_p2 }
  0xeb   : > { %3298 = dma.done.wait (%p4199_p8), [#allocation9], 32  }
  0xec   : > { %3300 = vsyncadd (%p4200_p10), [#allocation9], 4294967264  ;;  %p4201_p12 = pmov %p4195_p2 }
  0xed   : > { %p4202_p13 = pmov %p4195_p2 }
  0xee   : > { %3302 = dma.done.wait (%p4201_p12), [#allocation12], 16  }
  0xef   : > { %3304 = vsyncadd (%p4202_p13), [#allocation12], 4294967280  ;;  %v847_v0 = vlaneseq  ;;  %v3328_v1 = vmov 1966171168   ;;  %v3329_v3 = vmov 0   ;;  %p821_p6 = scmp.lt.s32.totalorder %s3482_s26, 1 }
  0xf0   : > { %v845_v2 = vunpack.c.l.s4 %v3328_v1  ;;  %901 = vmatprep.mubr.bf16.mxu0 %v3329_v3  ;;  %2957 = vset.pattern.permute.xlu1 %v3329_v3  ;;  %s4203_s4 = sld [smem:[#allocation24_spill]]  ;;  %vm862_vm0 = vcmask 1040384   ;;  %s4204_s20 = sld [smem:[#allocation22_spill]]  ;;  %vm858_vm1 = vcmask 15360   ;;  %v830_v14 = vld [vmem:[#allocation2] sm:$0xf] }
  0xf1   : > { %v3739_v4 = vshrl.u32 %v847_v0, 7  ;;  %2958 = vset.pattern.permute.xlu0 %v3329_v3  ;;  %s3743_s23 = scalar_select %p821_p6, %s3482_s26, 1  ;;  %v3782_v54 = vld [vmem:[%s735_s25] sm:$0xff]  ;;  %v3330_v55 = vmov 1   ;;  %vm3334_vm2 = vmmov 0   ;;  %vm1335_vm3 = vcmask 523264  }
  0xf2   : > { %v846_v5 = vunpack.c.0.s8 %v845_v2  ;;  %s4206_s29 = sld [smem:[#allocation27_spill]]  ;;  %vm1463_vm4 = vcmask 261120   ;;  %vm1575_vm5 = vcmask 31744   ;;  %vm1634_vm6 = vcmask 1041408   ;;  %s4210_s16 = sld [smem:[#allocation31_spill]] }
  0xf3   : > { %s2601_s18 = sshll.u32 %s3743_s23, 2  ;;  %v3754_v13 = vsub.s32 0, %v3739_v4  ;;  %v917_v15 = vsub.s32 2, %v3739_v4  ;;  %v3758_v16 = vsub.s32 1, %v3739_v4  ;;  %v937_v17 = vsub.s32 3, %v3739_v4  ;;  %s2602_s2 = sshll.u32 %s3743_s23, 3 }
  0xf4   : > { %v849_v6 = vsub.s32 %v846_v5, %v3739_v4  ;;  %s828_s28 = scalar_lea.vmem %s4142_s13, %s2602_s2  ;;  %s4209_s23 = sld [smem:[#allocation30_spill]] }
  0xf5   : > { %v914_v18 = vrot.slane %v830_v14, %v3754_v13  ;;  %v918_v19 = vrot.slane %v830_v14, %v917_v15  ;;  %v934_v20 = vrot.slane %v830_v14, %v3758_v16  ;;  %v938_v21 = vrot.slane %v830_v14, %v937_v17  ;;  %s4211_s3 = sld [smem:[#allocation32_spill]]  ;;  %s4212_s2 = sld [smem:[#allocation33_spill]] }
  0xf6   : > { %v2603_v7 = vld.sshfl [vmem:[%s4203_s4] sm:$0x11 pattern:$0x75316420]  ;;  %s824_s27 = scalar_lea.vmem %s4204_s20, %s2601_s18  ;;  %s4205_s18 = sld [smem:[#allocation25_spill]] }
  0xf7   : > { %v843_v8 = vcombine.high %v2603_v7, %v2603_v7  ;;  %v850_v9 = vrot.slane %v2603_v7, %v849_v6  ;;  %v832_v12 = vld [vmem:[%s824_s27] sm:$0xf]  ;;  %v924_v22 = vrot.slane %v914_v18, %v3754_v13  ;;  %v928_v23 = vrot.slane %v918_v19, %v3754_v13  ;;  %s4207_s4 = sld [smem:[#allocation28_spill]]  ;;  %s4208_s20 = sld [smem:[#allocation29_spill]] }
  0xf8   : > { %v944_v25 = vrot.slane %v934_v20, %v3758_v16  ;;  %v948_v26 = vrot.slane %v938_v21, %v3758_v16  ;;  %p4214_p0 = scmp.ne.s32.totalorder %s4189_s6, 0 }
  0xf9   : > { %v857_v10 = vrot.slane %v843_v8, %v849_v6  ;;  %v864_v11 = vsel %vm862_vm0, %v850_v9, 0  ;;  %s2683_s0 = sshll.u32 (%p4214_p0), %s3482_s26, 3 }
  0xfb   : > { %2604 = vmatprep.subr.msk.bf16.mxu0 %vm862_vm0, %v857_v10 }
  0xfc   : > { %870 = vmatpush1.bf16.msra.mxu0 %v864_v11  ;;  %v2987_v51 = vld [vmem:[%s4205_s18 + $0x40] sm:$0xff]   ;;  %v2989_v53 = vld [vmem:[%s4205_s18 + $0x48] sm:$0xff]   ;;  %v2991_v57 = vld [vmem:[%s4205_s18 + $0x50] sm:$0xff]  }
  0xfd   : > { %v2988_v52 = vld [vmem:[%s4205_s18] sm:$0xff]   ;;  %2686 = vmatprep.subr.bf16.mxu1 %v2987_v51  ;;  %v2990_v56 = vld [vmem:[%s4205_s18 + $0x8] sm:$0xff]   ;;  %v2992_v58 = vld [vmem:[%s4205_s18 + $0x10] sm:$0xff]  }
  0xfe   : > { %2687 = vmatpush3.bf16.msra.mxu1 %v2988_v52  ;;  %v2993_v59 = vld [vmem:[%s4205_s18 + $0x58] sm:$0xff]   ;;  %v2995_v61 = vld [vmem:[%s4205_s18 + $0x60] sm:$0xff]   ;;  %v2997_v63 = vld [vmem:[%s4205_s18 + $0x68] sm:$0xff]   ;;  %v3331_v52 = vmov 2  }
  0xff   : > { %2605 = vmatmul.mubr.msk.bf16.vlgmr.msra.gmra.mrb[0].mxu0 %vm858_vm1, %v832_v12  ;;  %2688 = vmatprep.subr.bf16.mxu1 %v2989_v53  ;;  %v2994_v60 = vld [vmem:[%s4205_s18 + $0x18] sm:$0xff]   ;;  %v2996_v62 = vld [vmem:[%s4205_s18 + $0x20] sm:$0xff]   ;;  %v2998_v0 = vld [vmem:[%s4205_s18 + $0x28] sm:$0xff]  }
 0x100   : > { %v2999_v10 = vld [vmem:[%s4205_s18 + $0x70] sm:$0xff]   ;;  %v3001_v12 = vld [vmem:[%s4205_s18 + $0x78] sm:$0xff]   ;;  %v3003_v53 = vld [vmem:[%s4206_s29] sm:$0xff]  }
 0x101   : > { %v3000_v11 = vld [vmem:[%s4205_s18 + $0x30] sm:$0xff]   ;;  %v3002_v14 = vld [vmem:[%s4205_s18 + $0x38] sm:$0xff]  }
 0x102   : > { %2689 = vmatpush3.bf16.msra.mxu1 %v2990_v56  ;;  %v3332_v56 = vmov 3  }
 0x103   : > { %2690 = vmatprep.subr.bf16.mxu1 %v2991_v57  ;;  %v3333_v57 = vmov 0.0  }
 0x104   : > { %2764 = vmatprep.subr.bf16.mxu0 %v3333_v57  ;;  %2780 = vmatprep.mubr.msk.bf16.mxu0 %vm3334_vm2, %v3333_v57 }
 0x105   : > { %2765 = vmatpush3.bf16.msra.mxu0 %v3003_v53  ;;  %v3012_v53 = vld [vmem:[%s4138_s9 + $0x8] sm:$0xff]  }
 0x106   : > { %2691 = vmatpush3.bf16.msra.mxu1 %v2992_v58  ;;  %v3004_v58 = vld [vmem:[%s4206_s29 + $0x8] sm:$0xff]   ;;  %2766 = vmatprep.subr.bf16.mxu0 %v3333_v57 }
 0x107   : > { %2692 = vmatprep.subr.bf16.mxu1 %v2993_v59  ;;  %v3005_v59 = vld [vmem:[%s4206_s29 + $0x10] sm:$0xff]  }
 0x109   : > { %2767 = vmatpush3.bf16.msra.mxu0 %v3004_v58  ;;  %v3013_v58 = vld [vmem:[%s4138_s9 + $0x10] sm:$0xff]  }
 0x10a   : > { %2693 = vmatpush3.bf16.msra.mxu1 %v2994_v60  ;;  %2768 = vmatprep.subr.bf16.mxu0 %v3333_v57  ;;  %v3006_v60 = vld [vmem:[%s4206_s29 + $0x18] sm:$0xff]  }
 0x10b   : > { %2694 = vmatprep.subr.bf16.mxu1 %v2995_v61  ;;  %v3007_v61 = vld [vmem:[%s4206_s29 + $0x20] sm:$0xff]  }
 0x10d   : > { %2769 = vmatpush3.bf16.msra.mxu0 %v3005_v59  ;;  %v3336_v59 = vmov 5  }
 0x10e   : > { %2695 = vmatpush3.bf16.msra.mxu1 %v2996_v62  ;;  %2770 = vmatprep.subr.bf16.mxu0 %v3333_v57  ;;  %v3008_v62 = vld [vmem:[%s4206_s29 + $0x28] sm:$0xff]  }
 0x10f   : > { %2696 = vmatprep.subr.bf16.mxu1 %v2997_v63 }
 0x111   : > { %2771 = vmatpush3.bf16.msra.mxu0 %v3006_v60  ;;  %v3014_v60 = vld [vmem:[%s4138_s9 + $0x18] sm:$0xff]  }
 0x112   : > { %2697 = vmatpush3.bf16.msra.mxu1 %v2998_v0  ;;  %2772 = vmatprep.subr.bf16.mxu0 %v3333_v57 }
 0x113   : > { %2698 = vmatprep.subr.bf16.mxu1 %v2999_v10 }
 0x115   : > { %2773 = vmatpush3.bf16.msra.mxu0 %v3007_v61 }
 0x116   : > { %2699 = vmatpush3.bf16.msra.mxu1 %v3000_v11  ;;  %2774 = vmatprep.subr.bf16.mxu0 %v3333_v57 }
 0x117   : > { %2700 = vmatprep.subr.bf16.mxu1 %v3001_v12 }
 0x119   : > { %2775 = vmatpush3.bf16.msra.mxu0 %v3008_v62 }
 0x11a   : > { %2701 = vmatpush3.bf16.msra.mxu1 %v3002_v14  ;;  %2776 = vmatprep.subr.bf16.mxu0 %v3333_v57 }
 0x11b   : > { %2784 = vmatprep.subr.bf16.mxu1 %v3333_v57 }
 0x1d2   : > { %v903_v24 = vpop.f32.mrb[0].mxu0 }
 0x1d3   : > { %v929_v27 = vadd.f32 %v924_v22, %v903_v24  ;;  %v905_v28 = vpop.f32.mrb[1].mxu0  ;;  %v949_v32 = vadd.f32 %v944_v25, %v903_v24 }
 0x1d4   : > { %v930_v29 = vadd.f32 %v928_v23, %v905_v28  ;;  %v907_v30 = vpop.f32.mrb[2].mxu0  ;;  %v950_v33 = vadd.f32 %v948_v26, %v905_v28 }
 0x1d5   : > { %v908_v31 = vpop.f32.mrb[3].mxu0 }
 0x1d6   : > { %v951_v34 = vadd.f32 %v930_v29, %v929_v27  ;;  %v954_v35 = vadd.f32 %v950_v33, %v949_v32 }
 0x1d8   : > { %952 = vadd.xlane.f32.xlu0 %v951_v34 }
 0x1dc   : > { %955 = vadd.xlane.f32.xlu0 %v954_v35 }
 0x265   : > { %v953_v36 = vpop.xlane.xlu0 %952 }
 0x269   : > { %v956_v37 = vpop.xlane.xlu0 %955 }
 0x26a   : > { %v957_v38 = vadd.f32 %v956_v37, %v953_v36  ;;  %v2606_v36 = vld [vmem:[#allocation7] ss:$0 sm:$0xff] }
 0x26c   : > { %v958_v39 = vmul.f32 0.001953125, %v957_v38 }
 0x26e   : > { %961 = vperm.xlu1 %2957, %v958_v39  }
 0x272   : > { %2959 = vset.pattern.permute.xlu1 %v3330_v55 }
 0x2ed   : > { %v962_v40 = vpop.permute.xlu1 %961 }
 0x2ee   : > { %v966_v41 = vsub.f32 %v949_v32, %v962_v40  ;;  %v967_v42 = vsub.f32 %v950_v33, %v962_v40  ;;  %v964_v43 = vsub.f32 %v929_v27, %v962_v40  ;;  %v965_v44 = vsub.f32 %v930_v29, %v962_v40 }
 0x2f0   : > { %v970_v45 = vmul.f32 %v966_v41, %v966_v41  ;;  %v971_v46 = vmul.f32 %v967_v42, %v967_v42  ;;  %v968_v47 = vmul.f32 %v964_v43, %v964_v43  ;;  %v969_v48 = vmul.f32 %v965_v44, %v965_v44 }
 0x2f2   : > { %v975_v49 = vadd.f32 %v971_v46, %v970_v45  ;;  %v972_v50 = vadd.f32 %v969_v48, %v968_v47 }
 0x2f4   : > { %976 = vadd.xlane.f32.xlu0 %v975_v49  ;;  %973 = vadd.xlane.f32.xlu1 %v972_v50 }
 0x305   : > { %994 = vperm.xlu1 %2959, %v3782_v54  }
 0x309   : > { %2960 = vset.pattern.permute.xlu1 %v3331_v52 }
 0x381   : > { %v977_v1 = vpop.xlane.xlu0 %976  ;;  %v974_v2 = vpop.xlane.xlu1 %973 }
 0x382   : > { %v978_v5 = vadd.f32 %v977_v1, %v974_v2 }
 0x384   : > { %v979_v6 = vmul.f32 0.001953125, %v978_v5 }
 0x385   : > { %v995_v19 = vpop.permute.xlu1 %994 }
 0x386   : > { %v980_v7 = vadd.f32 1e-05, %v979_v6 }
 0x388   : > { %3047 = vrsqrt.f32 %v980_v7 }
 0x392   : > { %v3048_v8 = vpop.eup %3047 }
 0x393   : > { %v982_v9 = vmul.f32 %v3048_v8, %v3782_v54  ;;  %v3009_v8 = vld [vmem:[%s4206_s29 + $0x30] sm:$0xff]  }
 0x394   : > { %2777 = vmatpush3.bf16.msra.mxu0 %v3009_v8  ;;  %v2632_v8 = vld [vmem:[#allocation10] ss:$0 sm:$0xff] }
 0x395   : > { %985 = vperm.xlu0 %2958, %v982_v9   ;;  %2778 = vmatprep.subr.bf16.mxu0 %v3333_v57  ;;  %v3010_v9 = vld [vmem:[%s4206_s29 + $0x38] sm:$0xff]  }
 0x398   : > { %2779 = vmatpush3.bf16.msra.mxu0 %v3010_v9 }
 0x399   : > { %2796 = vmatprep.subr.bf16.mxu0 %v3333_v57 }
 0x414   : > { %v986_v18 = vpop.permute.xlu0 %985 }
 0x415   : > { %v988_v20 = vmul.f32 %v986_v18, %v964_v43  ;;  %v990_v21 = vmul.f32 %v986_v18, %v966_v41  ;;  %v989_v22 = vmul.f32 %v986_v18, %v965_v44  ;;  %v991_v23 = vmul.f32 %v986_v18, %v967_v42 }
 0x417   : > { %v997_v24 = vadd.f32 %v995_v19, %v988_v20  ;;  %v999_v25 = vadd.f32 %v995_v19, %v990_v21  ;;  %v998_v26 = vadd.f32 %v995_v19, %v989_v22  ;;  %v1000_v27 = vadd.f32 %v995_v19, %v991_v23  ;;  %v2623_v23 = vld [vmem:[#allocation8] ss:$0 sm:$0xff] }
 0x419   : > { %v1002_v28 = vmax.f32 %v998_v26, 0.0  ;;  %v1004_v29 = vmax.f32 %v1000_v27, 0.0  ;;  %v1001_v30 = vmax.f32 %v997_v24, 0.0  ;;  %v1003_v31 = vmax.f32 %v999_v25, 0.0 }
 0x41b   : > { %v1039_v32 = vpack.c.bf16 %v1004_v29, %v1002_v28  ;;  %v1038_v33 = vpack.c.bf16 %v1003_v31, %v1001_v30 }
 0x41d   : > { %1174 = vmatprep.mubr.bf16.mxu1 %v1039_v32 }
 0x41e   : > { %1175 = vmatmul.mubr.bf16.vlgmr.msra.gmra.mrb[0].mxu1 %v1038_v33 }
 0x41f   : > { %2792 = vmatprep.mubr.msk.bf16.mxu1 %vm3334_vm2, %v3333_v57 }
 0x4f1   : > { %v2702_v34 = vpop.f32.mrb[0].mxu1 }
 0x4f2   : > { %v2703_v35 = vpop.f32.mrb[1].mxu1 }
 0x4f3   : > { %v2704_v37 = vadd.f32 %v2703_v35, %v2702_v34  ;;  %v2705_v38 = vpop.f32.mrb[2].mxu1 }
 0x4f4   : > { %v2706_v39 = vpop.f32.mrb[3].mxu1 }
 0x4f5   : > { %v2707_v40 = vadd.f32 %v2706_v39, %v2705_v38  ;;  %v1177_v41 = vadd.f32 %v2704_v37, %v2606_v36 }
 0x4f7   : > { %1183 = vadd.xlane.f32.xlu0 %v1177_v41  ;;  %v1180_v42 = vadd.f32 %v2707_v40, %v2606_v36 }
 0x4f9   : > { %1185 = vadd.xlane.f32.xlu1 %v1180_v42 }
 0x584   : > { %v1184_v43 = vpop.xlane.xlu0 %1183 }
 0x586   : > { %v1186_v44 = vpop.xlane.xlu1 %1185 }
 0x587   : > { %v1187_v45 = vadd.f32 %v1186_v44, %v1184_v43  ;;  %v3335_v43 = vmov 4   ;;  %v3011_v44 = vld [vmem:[%s4138_s9] sm:$0xff]  }
 0x588   : > { %2785 = vmatpush3.bf16.msra.mxu1 %v3011_v44 }
 0x589   : > { %v1188_v46 = vmul.f32 0.00390625, %v1187_v45  ;;  %2786 = vmatprep.subr.bf16.mxu1 %v3333_v57 }
 0x58b   : > { %1191 = vperm.xlu0 %2958, %v1188_v46  }
 0x58c   : > { %2787 = vmatpush3.bf16.msra.mxu1 %v3012_v53 }
 0x58d   : > { %2788 = vmatprep.subr.bf16.mxu1 %v3333_v57 }
 0x58f   : > { %2961 = vset.pattern.permute.xlu0 %v3332_v56 }
 0x590   : > { %1215 = vperm.xlu0 %2961, %v3782_v54   ;;  %2789 = vmatpush3.bf16.msra.mxu1 %v3013_v58  ;;  %v2638_v58 = vld [vmem:[#allocation11] ss:$0 sm:$0xff] }
 0x591   : > { %2790 = vmatprep.subr.bf16.mxu1 %v3333_v57 }
 0x594   : > { %2962 = vset.pattern.permute.xlu0 %v3329_v3  ;;  %2791 = vmatpush3.bf16.msra.mxu1 %v3014_v60 }
 0x60a   : > { %v1192_v47 = vpop.permute.xlu0 %1191 }
 0x60b   : > { %v1194_v48 = vsub.f32 %v1177_v41, %v1192_v47  ;;  %v1195_v49 = vsub.f32 %v1180_v42, %v1192_v47 }
 0x60d   : > { %v1196_v50 = vmul.f32 %v1194_v48, %v1194_v48  ;;  %v1197_v51 = vmul.f32 %v1195_v49, %v1195_v49 }
 0x60f   : > { %1198 = vadd.xlane.f32.xlu1 %v1196_v50  ;;  %v1216_v11 = vpop.permute.xlu0 %1215 }
 0x613   : > { %1200 = vadd.xlane.f32.xlu1 %v1197_v51 }
 0x69c   : > { %v1199_v63 = vpop.xlane.xlu1 %1198 }
 0x6a0   : > { %v1201_v0 = vpop.xlane.xlu1 %1200 }
 0x6a1   : > { %v1202_v1 = vadd.f32 %v1201_v0, %v1199_v63 }
 0x6a3   : > { %v1203_v2 = vmul.f32 0.00390625, %v1202_v1 }
 0x6a5   : > { %v1204_v5 = vadd.f32 1e-05, %v1203_v2 }
 0x6a7   : > { %3049 = vrsqrt.f32 %v1204_v5 }
 0x6b1   : > { %v3050_v6 = vpop.eup %3049 }
 0x6b2   : > { %v1206_v7 = vmul.f32 %v3050_v6, %v3782_v54 }
 0x6b4   : > { %1209 = vperm.xlu1 %2960, %v1206_v7  }
 0x6b8   : > { %2963 = vset.pattern.permute.xlu1 %v3335_v43 }
 0x733   : > { %v1210_v10 = vpop.permute.xlu1 %1209 }
 0x734   : > { %v1212_v12 = vmul.f32 %v1210_v10, %v1194_v48  ;;  %v1213_v14 = vmul.f32 %v1210_v10, %v1195_v49 }
 0x736   : > { %v1218_v18 = vadd.f32 %v1216_v11, %v1212_v12  ;;  %v1219_v19 = vadd.f32 %v1216_v11, %v1213_v14 }
 0x738   : > { %v1220_v20 = vmax.f32 %v1218_v18, 0.0  ;;  %v1221_v21 = vmax.f32 %v1219_v19, 0.0 }
 0x73a   : > { %v1239_v22 = vpack.c.bf16 %v1221_v21, %v1220_v20 }
 0x73c   : > { %2781 = vmatmul.mubr.bf16.vlgmr.msra.gmra.mrb[4].mxu0 %v1239_v22 }
 0x73d   : > { %2800 = vmatprep.mubr.msk.bf16.mxu0 %vm3334_vm2, %v3333_v57 }
 0x80f   : > { %v1328_v24 = vpop.f32.mrb[4].mxu0 }
 0x810   : > { %v1329_v25 = vadd.f32 %v2623_v23, %v1328_v24  ;;  %v2782_v26 = vpop.f32.mrb[5].mxu0 }
 0x811   : > { %v1331_v27 = vpop.f32.mrb[6].mxu0 }
 0x812   : > { %v1332_v28 = vadd.f32 %v2623_v23, %v1331_v27  ;;  %v2783_v29 = vpop.f32.mrb[7].mxu0  ;;  %v1336_v30 = vsel %vm1335_vm3, %v1329_v25, 0.0 }
 0x813   : > { %1337 = vadd.xlane.f32.xlu0 %v1336_v30 }
 0x814   : > { %v1339_v31 = vsel %vm1335_vm3, %v1332_v28, 0.0 }
 0x815   : > { %1340 = vadd.xlane.f32.xlu1 %v1339_v31 }
 0x8a0   : > { %v1338_v32 = vpop.xlane.xlu0 %1337 }
 0x8a2   : > { %v1341_v33 = vpop.xlane.xlu1 %1340 }
 0x8a3   : > { %v1342_v34 = vadd.f32 %v1341_v33, %v1338_v32  ;;  %v3337_v32 = vmov 6   ;;  %v3338_v33 = vmov 7  }
 0x8a5   : > { %v1343_v35 = vmul.f32 0.0078125, %v1342_v34 }
 0x8a7   : > { %1346 = vperm.xlu0 %2962, %v1343_v35  }
 0x8ab   : > { %2966 = vset.pattern.permute.xlu0 %v3337_v32 }
 0x926   : > { %v1347_v36 = vpop.permute.xlu0 %1346 }
 0x927   : > { %v1349_v37 = vsub.f32 %v1329_v25, %v1347_v36  ;;  %v1350_v38 = vsub.f32 %v1332_v28, %v1347_v36 }
 0x929   : > { %v1351_v39 = vmul.f32 %v1349_v37, %v1349_v37  ;;  %v1352_v41 = vmul.f32 %v1350_v38, %v1350_v38 }
 0x92b   : > { %v1353_v40 = vsel %vm1335_vm3, %v1351_v39, 0.0  ;;  %v1356_v42 = vsel %vm1335_vm3, %v1352_v41, 0.0  ;;  %v3015_v41 = vld [vmem:[%s4140_s11] sm:$0xff]  }
 0x92c   : > { %1354 = vadd.xlane.f32.xlu1 %v1353_v40  ;;  %2797 = vmatpush3.bf16.msra.mxu0 %v3015_v41 }
 0x92d   : > { %2798 = vmatprep.subr.bf16.mxu0 %v3333_v57 }
 0x930   : > { %1357 = vadd.xlane.f32.xlu1 %v1356_v42  ;;  %v3016_v42 = vld [vmem:[%s4140_s11 + $0x8] sm:$0xff]  }
 0x931   : > { %2799 = vmatpush3.bf16.msra.mxu0 %v3016_v42 }
 0x9b9   : > { %v1355_v45 = vpop.xlane.xlu1 %1354 }
 0x9bd   : > { %v1358_v46 = vpop.xlane.xlu1 %1357 }
 0x9be   : > { %v1359_v47 = vadd.f32 %v1358_v46, %v1355_v45 }
 0x9c0   : > { %v1360_v48 = vmul.f32 0.0078125, %v1359_v47 }
 0x9c2   : > { %v1361_v49 = vadd.f32 1e-05, %v1360_v48 }
 0x9c4   : > { %3051 = vrsqrt.f32 %v1361_v49 }
 0x9ce   : > { %v3052_v50 = vpop.eup %3051 }
 0x9cf   : > { %v1363_v51 = vmul.f32 %v3052_v50, %v3782_v54 }
 0x9d1   : > { %1366 = vperm.xlu1 %2963, %v1363_v51  }
 0x9d5   : > { %2964 = vset.pattern.permute.xlu1 %v3336_v59 }
 0x9d6   : > { %1372 = vperm.xlu1 %2964, %v3782_v54  }
 0x9da   : > { %2965 = vset.pattern.permute.xlu1 %v3329_v3 }
 0xa50   : > { %v1367_v61 = vpop.permute.xlu1 %1366 }
 0xa51   : > { %v1369_v62 = vmul.f32 %v1367_v61, %v1349_v37  ;;  %v1370_v63 = vmul.f32 %v1367_v61, %v1350_v38 }
 0xa55   : > { %v1373_v0 = vpop.permute.xlu1 %1372 }
 0xa56   : > { %v1375_v1 = vadd.f32 %v1373_v0, %v1369_v62  ;;  %v1376_v2 = vadd.f32 %v1373_v0, %v1370_v63 }
 0xa58   : > { %v1377_v5 = vmax.f32 %v1375_v1, 0.0  ;;  %v1378_v6 = vmax.f32 %v1376_v2, 0.0 }
 0xa5a   : > { %v1388_v7 = vpack.c.bf16 %v1378_v6, %v1377_v5 }
 0xa5c   : > { %2793 = vmatmul.mubr.msk.bf16.vlgmr.msra.gmra.mrb[4].mxu1 %vm1335_vm3, %v1388_v7 }
 0xb2f   : > { %v1456_v9 = vpop.f32.mrb[4].mxu1 }
 0xb30   : > { %v1457_v10 = vadd.f32 %v2632_v8, %v1456_v9  ;;  %v2794_v11 = vpop.f32.mrb[5].mxu1 }
 0xb31   : > { %v1459_v12 = vpop.f32.mrb[6].mxu1 }
 0xb32   : > { %v1460_v14 = vadd.f32 %v2632_v8, %v1459_v12  ;;  %v2795_v18 = vpop.f32.mrb[7].mxu1  ;;  %v1464_v19 = vsel %vm1463_vm4, %v1457_v10, 0.0 }
 0xb33   : > { %1465 = vadd.xlane.f32.xlu1 %v1464_v19 }
 0xb34   : > { %v1467_v20 = vsel %vm1463_vm4, %v1460_v14, 0.0 }
 0xb35   : > { %1468 = vadd.xlane.f32.xlu0 %v1467_v20 }
 0xbc0   : > { %v1466_v21 = vpop.xlane.xlu1 %1465 }
 0xbc2   : > { %v1469_v22 = vpop.xlane.xlu0 %1468 }
 0xbc3   : > { %v1470_v23 = vadd.f32 %v1469_v22, %v1466_v21  ;;  %v3339_v21 = vmov 8   ;;  %v2642_v22 = vld.sshfl [vmem:[%s4143_s14] sm:$0x33 pattern:$0x76325410] }
 0xbc5   : > { %v1471_v24 = vmul.f32 0.015625, %v1470_v23  ;;  %v3340_v23 = vmov 9  }
 0xbc7   : > { %1474 = vperm.xlu1 %2965, %v1471_v24   ;;  %v1630_v24 = vcombine.high %v2642_v22, %v2642_v22 }
 0xbc9   : > { %2643 = vmatprep.subr.msk.bf16.mxu0 %vm1634_vm6, %v1630_v24  ;;  %v3018_v24 = vld [vmem:[%s4144_s15] sm:$0xff]  }
 0xbcb   : > { %2967 = vset.pattern.permute.xlu1 %v3338_v33 }
 0xbcc   : > { %1500 = vperm.xlu1 %2967, %v3782_v54  }
 0xbd0   : > { %2968 = vset.pattern.permute.xlu1 %v3329_v3 }
 0xc46   : > { %v1475_v25 = vpop.permute.xlu1 %1474 }
 0xc47   : > { %v1477_v26 = vsub.f32 %v1457_v10, %v1475_v25  ;;  %v1478_v27 = vsub.f32 %v1460_v14, %v1475_v25 }
 0xc49   : > { %v1479_v28 = vmul.f32 %v1477_v26, %v1477_v26  ;;  %v1480_v30 = vmul.f32 %v1478_v27, %v1478_v27 }
 0xc4b   : > { %v1481_v29 = vsel %vm1463_vm4, %v1479_v28, 0.0  ;;  %v1484_v31 = vsel %vm1463_vm4, %v1480_v30, 0.0  ;;  %v1501_v45 = vpop.permute.xlu1 %1500 }
 0xc4c   : > { %1482 = vadd.xlane.f32.xlu0 %v1481_v29 }
 0xc50   : > { %1485 = vadd.xlane.f32.xlu0 %v1484_v31 }
 0xcd9   : > { %v1483_v34 = vpop.xlane.xlu0 %1482 }
 0xcdd   : > { %v1486_v35 = vpop.xlane.xlu0 %1485 }
 0xcde   : > { %v1487_v36 = vadd.f32 %v1486_v35, %v1483_v34  ;;  %v1636_v34 = vsel %vm1634_vm6, %v2642_v22, 0 }
 0xce0   : > { %v1488_v37 = vmul.f32 0.015625, %v1487_v36 }
 0xce2   : > { %v1489_v38 = vadd.f32 1e-05, %v1488_v37 }
 0xce4   : > { %3053 = vrsqrt.f32 %v1489_v38 }
 0xcee   : > { %v3054_v39 = vpop.eup %3053 }
 0xcef   : > { %v1491_v40 = vmul.f32 %v3054_v39, %v3782_v54 }
 0xcf1   : > { %1494 = vperm.xlu0 %2966, %v1491_v40  }
 0xcf5   : > { %2969 = vset.pattern.permute.xlu0 %v3339_v21 }
 0xd70   : > { %v1495_v44 = vpop.permute.xlu0 %1494 }
 0xd71   : > { %v1497_v46 = vmul.f32 %v1495_v44, %v1477_v26  ;;  %v1498_v47 = vmul.f32 %v1495_v44, %v1478_v27 }
 0xd73   : > { %v1503_v48 = vadd.f32 %v1501_v45, %v1497_v46  ;;  %v1504_v49 = vadd.f32 %v1501_v45, %v1498_v47 }
 0xd75   : > { %v1505_v50 = vmax.f32 %v1503_v48, 0.0  ;;  %v1506_v51 = vmax.f32 %v1504_v49, 0.0 }
 0xd77   : > { %v1512_v53 = vpack.c.bf16 %v1506_v51, %v1505_v50 }
 0xd79   : > { %2801 = vmatmul.mubr.msk.bf16.vlgmr.msra.gmra.mrb[8].mxu0 %vm1463_vm4, %v1512_v53 }
 0xd7a   : > { %1673 = vmatprep.mubr.bf16.mxu0 %v3329_v3  ;;  %1642 = vmatpush1.bf16.msra.mxu0 %v1636_v34  ;;  %v3026_v34 = vld [vmem:[%s4144_s15 + $0x20] sm:$0xff]  }
 0xd7b   : > { %2804 = vmatprep.subr.bf16.mxu0 %v3333_v57 }
 0xe4c   : > { %v1568_v60 = vpop.f32.mrb[8].mxu0 }
 0xe4d   : > { %v1569_v61 = vadd.f32 %v2638_v58, %v1568_v60  ;;  %v2802_v62 = vpop.f32.mrb[9].mxu0 }
 0xe4e   : > { %v1571_v63 = vpop.f32.mrb[10].mxu0 }
 0xe4f   : > { %v1572_v0 = vadd.f32 %v2638_v58, %v1571_v63  ;;  %v2803_v1 = vpop.f32.mrb[11].mxu0  ;;  %v1576_v2 = vsel %vm1575_vm5, %v1569_v61, 0.0 }
 0xe50   : > { %1577 = vadd.xlane.f32.xlu1 %v1576_v2 }
 0xe51   : > { %v1579_v5 = vsel %vm1575_vm5, %v1572_v0, 0.0 }
 0xe52   : > { %1580 = vadd.xlane.f32.xlu0 %v1579_v5 }
 0xedd   : > { %v1578_v6 = vpop.xlane.xlu1 %1577 }
 0xedf   : > { %v1581_v7 = vpop.xlane.xlu0 %1580 }
 0xee0   : > { %v1582_v8 = vadd.f32 %v1581_v7, %v1578_v6 }
 0xee2   : > { %v1583_v9 = vmul.f32 0.125, %v1582_v8 }
 0xee4   : > { %1586 = vperm.xlu1 %2968, %v1583_v9  }
 0xee8   : > { %2970 = vset.pattern.permute.xlu1 %v3340_v23 }
 0xf63   : > { %v1587_v10 = vpop.permute.xlu1 %1586 }
 0xf64   : > { %v1589_v11 = vsub.f32 %v1569_v61, %v1587_v10  ;;  %v1590_v12 = vsub.f32 %v1572_v0, %v1587_v10 }
 0xf66   : > { %v1592_v14 = vmul.f32 %v1590_v12, %v1590_v12  ;;  %v1591_v18 = vmul.f32 %v1589_v11, %v1589_v11 }
 0xf68   : > { %v1596_v19 = vsel %vm1575_vm5, %v1592_v14, 0.0  ;;  %v1593_v20 = vsel %vm1575_vm5, %v1591_v18, 0.0 }
 0xf69   : > { %1597 = vadd.xlane.f32.xlu0 %v1596_v19  ;;  %1594 = vadd.xlane.f32.xlu1 %v1593_v20 }
 0xf7a   : > { %1612 = vperm.xlu1 %2970, %v3782_v54  }
 0xf7e   : > { %2971 = vset.pattern.permute.xlu1 %v3329_v3 }
 0xff6   : > { %v1598_v25 = vpop.xlane.xlu0 %1597  ;;  %v1595_v26 = vpop.xlane.xlu1 %1594 }
 0xff7   : > { %v1599_v27 = vadd.f32 %v1598_v25, %v1595_v26  ;;  %v3019_v25 = vld [vmem:[%s4144_s15 + $0x48] sm:$0xff]  }
 0xff8   : > { %v3020_v26 = vld [vmem:[%s4144_s15 + $0x8] sm:$0xff]  }
 0xff9   : > { %v1600_v28 = vmul.f32 0.125, %v1599_v27  ;;  %v3021_v27 = vld [vmem:[%s4144_s15 + $0x50] sm:$0xff]  }
 0xffa   : > { %v1613_v36 = vpop.permute.xlu1 %1612 }
 0xffb   : > { %v1601_v29 = vadd.f32 1e-05, %v1600_v28  ;;  %v3022_v28 = vld [vmem:[%s4144_s15 + $0x10] sm:$0xff]  }
 0xffd   : > { %3055 = vrsqrt.f32 %v1601_v29  ;;  %v3023_v29 = vld [vmem:[%s4144_s15 + $0x58] sm:$0xff]  }
0x1007   : > { %v3056_v30 = vpop.eup %3055 }
0x1008   : > { %v1603_v31 = vmul.f32 %v3056_v30, %v3782_v54  ;;  %v831_v54 = vld [vmem:[#allocation4] sm:$0xf]  ;;  %v3024_v30 = vld [vmem:[%s4144_s15 + $0x18] sm:$0xff]  }
0x1009   : > { %v1688_v45 = vrot.slane %v831_v54, %v3754_v13  ;;  %v1692_v46 = vrot.slane %v831_v54, %v917_v15  ;;  %v1708_v47 = vrot.slane %v831_v54, %v3758_v16  ;;  %v1712_v48 = vrot.slane %v831_v54, %v937_v17  ;;  %v3029_v54 = vld [vmem:[%s4144_s15 + $0x70] sm:$0xff]  }
0x100a   : > { %1606 = vperm.xlu0 %2969, %v1603_v31   ;;  %v3025_v31 = vld [vmem:[%s4144_s15 + $0x60] sm:$0xff]  }
0x100b   : > { %v1698_v49 = vrot.slane %v1688_v45, %v3754_v13  ;;  %v1702_v50 = vrot.slane %v1692_v46, %v3754_v13  ;;  %v1718_v51 = vrot.slane %v1708_v47, %v3758_v16  ;;  %v1722_v58 = vrot.slane %v1712_v48, %v3758_v16  ;;  %v3947_v16 = vld [vmem:[%s828_s28] sm:$0xff]  ;;  %v3030_v45 = vld [vmem:[%s4144_s15 + $0x30] sm:$0xff]   ;;  %v3031_v46 = vld [vmem:[%s4144_s15 + $0x78] sm:$0xff]   ;;  %s4215_s28 = sld [smem:[#allocation35_spill]] (%p4214_p0) }
0x100c   : > { %v3032_v47 = vld [vmem:[%s4144_s15 + $0x38] sm:$0xff]  }
0x100e   : > { %2972 = vset.pattern.permute.xlu0 %v3329_v3 }
0x1089   : > { %v1607_v35 = vpop.permute.xlu0 %1606 }
0x108a   : > { %v1609_v37 = vmul.f32 %v1607_v35, %v1589_v11  ;;  %v1610_v38 = vmul.f32 %v1607_v35, %v1590_v12  ;;  %v3027_v35 = vld [vmem:[%s4144_s15 + $0x68] sm:$0xff]  }
0x108c   : > { %v1615_v39 = vadd.f32 %v1613_v36, %v1609_v37  ;;  %v1616_v40 = vadd.f32 %v1613_v36, %v1610_v38  ;;  %v3028_v36 = vld [vmem:[%s4144_s15 + $0x28] sm:$0xff]  }
0x108e   : > { %v1617_v41 = vmax.f32 %v1615_v39, 0.0  ;;  %v1618_v42 = vmax.f32 %v1616_v40, 0.0 }
0x1090   : > { %v1621_v44 = vpack.c.bf16 %v1618_v42, %v1617_v41 }
0x1092   : > { %2644 = vmatmul.mubr.msk.bf16.vlgmr.msra.gmra.mrb[12].mxu0 %vm1575_vm5, %v1621_v44 }
0x1093   : > { %2820 = vmatprep.mubr.msk.bf16.mxu0 %vm3334_vm2, %v3333_v57 }
0x1165   : > { %v1675_v53 = vpop.f32.mrb[12].mxu0 }
0x1166   : > { %v1703_v60 = vadd.f32 %v1698_v49, %v1675_v53  ;;  %v1677_v61 = vpop.f32.mrb[13].mxu0 }
0x1167   : > { %v1704_v62 = vadd.f32 %v1702_v50, %v1677_v61  ;;  %v1679_v63 = vpop.f32.mrb[14].mxu0 }
0x1168   : > { %v1723_v15 = vadd.f32 %v1718_v51, %v1679_v63  ;;  %v1681_v0 = vpop.f32.mrb[15].mxu0 }
0x1169   : > { %v1724_v1 = vadd.f32 %v1722_v58, %v1681_v0  ;;  %v1725_v2 = vadd.f32 %v1704_v62, %v1703_v60 }
0x116b   : > { %1726 = vadd.xlane.f32.xlu1 %v1725_v2  ;;  %v1728_v4 = vadd.f32 %v1724_v1, %v1723_v15 }
0x116d   : > { %1729 = vadd.xlane.f32.xlu0 %v1728_v4 }
0x11f8   : > { %v1727_v17 = vpop.xlane.xlu1 %1726 }
0x11fa   : > { %v1730_v5 = vpop.xlane.xlu0 %1729 }
0x11fb   : > { %v1731_v13 = vadd.f32 %v1730_v5, %v1727_v17 }
0x11fd   : > { %v1732_v6 = vmul.f32 0.001953125, %v1731_v13  ;;  %v2645_v13 = vld [vmem:[%s4207_s4] ss:$0 sm:$0xff]  ;;  %s4213_s4 = sld [smem:[#allocation34_spill]] }
0x11ff   : > { %1735 = vperm.xlu1 %2971, %v1732_v6  }
0x1203   : > { %2973 = vset.pattern.permute.xlu1 %v3330_v55  ;;  %v3017_v55 = vld [vmem:[%s4144_s15 + $0x40] sm:$0xff]  }
0x1204   : > { %1768 = vperm.xlu1 %2973, %v3947_v16   ;;  %2725 = vmatprep.subr.bf16.mxu1 %v3017_v55 }
0x1205   : > { %2726 = vmatpush3.bf16.msra.mxu1 %v3018_v24 }
0x1206   : > { %2727 = vmatprep.subr.bf16.mxu1 %v3019_v25 }
0x1208   : > { %2974 = vset.pattern.permute.xlu1 %v3329_v3 }
0x1209   : > { %2728 = vmatpush3.bf16.msra.mxu1 %v3020_v26  ;;  %v3033_v26 = vld [vmem:[%s4208_s20] sm:$0xff]  }
0x120a   : > { %2729 = vmatprep.subr.bf16.mxu1 %v3021_v27  ;;  %2805 = vmatpush3.bf16.msra.mxu0 %v3033_v26  ;;  %v3035_v27 = vld [vmem:[%s4208_s20 + $0x10] sm:$0xff]  }
0x120b   : > { %2806 = vmatprep.subr.bf16.mxu0 %v3333_v57 }
0x120d   : > { %2730 = vmatpush3.bf16.msra.mxu1 %v3022_v28  ;;  %v3036_v28 = vld [vmem:[%s4208_s20 + $0x18] sm:$0xff]  }
0x120e   : > { %2731 = vmatprep.subr.bf16.mxu1 %v3023_v29  ;;  %v3037_v29 = vld [vmem:[%s4208_s20 + $0x20] sm:$0xff]  }
0x1211   : > { %2732 = vmatpush3.bf16.msra.mxu1 %v3024_v30  ;;  %v3038_v30 = vld [vmem:[%s4208_s20 + $0x28] sm:$0xff]  }
0x1212   : > { %2733 = vmatprep.subr.bf16.mxu1 %v3025_v31 }
0x1215   : > { %2734 = vmatpush3.bf16.msra.mxu1 %v3026_v34 }
0x1216   : > { %2735 = vmatprep.subr.bf16.mxu1 %v3027_v35 }
0x1219   : > { %2736 = vmatpush3.bf16.msra.mxu1 %v3028_v36 }
0x121a   : > { %2737 = vmatprep.subr.bf16.mxu1 %v3029_v54 }
0x121d   : > { %2738 = vmatpush3.bf16.msra.mxu1 %v3030_v45 }
0x121e   : > { %2739 = vmatprep.subr.bf16.mxu1 %v3031_v46 }
0x1221   : > { %2740 = vmatpush3.bf16.msra.mxu1 %v3032_v47 }
0x1222   : > { %2824 = vmatprep.subr.bf16.mxu1 %v3333_v57 }
0x127e   : > { %v1736_v7 = vpop.permute.xlu1 %1735 }
0x127f   : > { %v1738_v8 = vsub.f32 %v1703_v60, %v1736_v7  ;;  %v1739_v9 = vsub.f32 %v1704_v62, %v1736_v7  ;;  %v1740_v10 = vsub.f32 %v1723_v15, %v1736_v7  ;;  %v1741_v11 = vsub.f32 %v1724_v1, %v1736_v7 }
0x1281   : > { %v1742_v12 = vmul.f32 %v1738_v8, %v1738_v8  ;;  %v1743_v14 = vmul.f32 %v1739_v9, %v1739_v9  ;;  %v1744_v19 = vmul.f32 %v1740_v10, %v1740_v10  ;;  %v1745_v20 = vmul.f32 %v1741_v11, %v1741_v11 }
0x1283   : > { %v1746_v18 = vadd.f32 %v1743_v14, %v1742_v12  ;;  %v1749_v22 = vadd.f32 %v1745_v20, %v1744_v19  ;;  %v1769_v49 = vpop.permute.xlu1 %1768 }
0x1285   : > { %1747 = vadd.xlane.f32.xlu0 %v1746_v18 }
0x1289   : > { %1750 = vadd.xlane.f32.xlu0 %v1749_v22 }
0x1312   : > { %v1748_v37 = vpop.xlane.xlu0 %1747 }
0x1316   : > { %v1751_v38 = vpop.xlane.xlu0 %1750 }
0x1317   : > { %v1752_v39 = vadd.f32 %v1751_v38, %v1748_v37 }
0x1319   : > { %v1753_v40 = vmul.f32 0.001953125, %v1752_v39 }
0x131b   : > { %v1754_v41 = vadd.f32 1e-05, %v1753_v40  ;;  %v3039_v40 = vld [vmem:[%s4208_s20 + $0x30] sm:$0xff]  }
0x131d   : > { %3057 = vrsqrt.f32 %v1754_v41  ;;  %v3040_v41 = vld [vmem:[%s4208_s20 + $0x38] sm:$0xff]  }
0x1327   : > { %v3058_v42 = vpop.eup %3057 }
0x1328   : > { %v1756_v44 = vmul.f32 %v3058_v42, %v3947_v16 }
0x132a   : > { %1759 = vperm.xlu0 %2972, %v1756_v44  }
0x132e   : > { %2975 = vset.pattern.permute.xlu0 %v3331_v52 }
0x13a9   : > { %v1760_v48 = vpop.permute.xlu0 %1759 }
0x13aa   : > { %v1762_v50 = vmul.f32 %v1760_v48, %v1738_v8  ;;  %v1763_v51 = vmul.f32 %v1760_v48, %v1739_v9  ;;  %v1764_v53 = vmul.f32 %v1760_v48, %v1740_v10  ;;  %v1765_v58 = vmul.f32 %v1760_v48, %v1741_v11 }
0x13ac   : > { %v1771_v60 = vadd.f32 %v1769_v49, %v1762_v50  ;;  %v1772_v61 = vadd.f32 %v1769_v49, %v1763_v51  ;;  %v1773_v62 = vadd.f32 %v1769_v49, %v1764_v53  ;;  %v1774_v63 = vadd.f32 %v1769_v49, %v1765_v58 }
0x13ae   : > { %v1775_v15 = vmax.f32 %v1771_v60, 0.0  ;;  %v1777_v0 = vmax.f32 %v1773_v62, 0.0  ;;  %v1776_v1 = vmax.f32 %v1772_v61, 0.0  ;;  %v1778_v2 = vmax.f32 %v1774_v63, 0.0 }
0x13b0   : > { %v1813_v4 = vpack.c.bf16 %v1778_v2, %v1776_v1  ;;  %v1812_v52 = vpack.c.bf16 %v1777_v0, %v1775_v15 }
0x13b2   : > { %1948 = vmatprep.mubr.bf16.mxu1 %v1813_v4 }
0x13b3   : > { %1949 = vmatmul.mubr.bf16.vlgmr.msra.gmra.mrb[8].mxu1 %v1812_v52 }
0x13b4   : > { %2832 = vmatprep.mubr.msk.bf16.mxu1 %vm3334_vm2, %v3333_v57 }
0x1486   : > { %v2741_v17 = vpop.f32.mrb[8].mxu1 }
0x1487   : > { %v2742_v5 = vpop.f32.mrb[9].mxu1 }
0x1488   : > { %v2743_v6 = vadd.f32 %v2742_v5, %v2741_v17  ;;  %v2744_v7 = vpop.f32.mrb[10].mxu1 }
0x1489   : > { %v2745_v8 = vpop.f32.mrb[11].mxu1 }
0x148a   : > { %v2746_v9 = vadd.f32 %v2745_v8, %v2744_v7  ;;  %v1951_v10 = vadd.f32 %v2743_v6, %v2645_v13 }
0x148c   : > { %1957 = vadd.xlane.f32.xlu1 %v1951_v10  ;;  %v1954_v11 = vadd.f32 %v2746_v9, %v2645_v13  ;;  %v3041_v9 = vld [vmem:[%s4210_s16] sm:$0xff]  }
0x148d   : > { %2825 = vmatpush3.bf16.msra.mxu1 %v3041_v9 }
0x148e   : > { %1959 = vadd.xlane.f32.xlu0 %v1954_v11  ;;  %2826 = vmatprep.subr.bf16.mxu1 %v3333_v57 }
0x1519   : > { %v1958_v12 = vpop.xlane.xlu1 %1957 }
0x151b   : > { %v1960_v14 = vpop.xlane.xlu0 %1959 }
0x151c   : > { %v1961_v18 = vadd.f32 %v1960_v14, %v1958_v12 }
0x151e   : > { %v1962_v19 = vmul.f32 0.00390625, %v1961_v18 }
0x1520   : > { %1965 = vperm.xlu1 %2974, %v1962_v19  }
0x1524   : > { %2976 = vset.pattern.permute.xlu1 %v3332_v56  ;;  %v3034_v56 = vld [vmem:[%s4208_s20 + $0x8] sm:$0xff]  }
0x1525   : > { %2807 = vmatpush3.bf16.msra.mxu0 %v3034_v56 }
0x1526   : > { %2808 = vmatprep.subr.bf16.mxu0 %v3333_v57 }
0x1529   : > { %2809 = vmatpush3.bf16.msra.mxu0 %v3035_v27 }
0x152a   : > { %2810 = vmatprep.subr.bf16.mxu0 %v3333_v57 }
0x152d   : > { %2811 = vmatpush3.bf16.msra.mxu0 %v3036_v28 }
0x152e   : > { %2812 = vmatprep.subr.bf16.mxu0 %v3333_v57 }
0x1531   : > { %2813 = vmatpush3.bf16.msra.mxu0 %v3037_v29 }
0x1532   : > { %2814 = vmatprep.subr.bf16.mxu0 %v3333_v57 }
0x1535   : > { %2815 = vmatpush3.bf16.msra.mxu0 %v3038_v30 }
0x1536   : > { %2816 = vmatprep.subr.bf16.mxu0 %v3333_v57 }
0x1539   : > { %2817 = vmatpush3.bf16.msra.mxu0 %v3039_v40 }
0x153a   : > { %2818 = vmatprep.subr.bf16.mxu0 %v3333_v57 }
0x153d   : > { %2819 = vmatpush3.bf16.msra.mxu0 %v3040_v41 }
0x153e   : > { %2836 = vmatprep.subr.bf16.mxu0 %v3333_v57 }
0x159f   : > { %v1966_v20 = vpop.permute.xlu1 %1965 }
0x15a0   : > { %v1968_v22 = vsub.f32 %v1951_v10, %v1966_v20  ;;  %v1969_v55 = vsub.f32 %v1954_v11, %v1966_v20 }
0x15a2   : > { %v1971_v24 = vmul.f32 %v1969_v55, %v1969_v55  ;;  %v1970_v25 = vmul.f32 %v1968_v22, %v1968_v22 }
0x15a4   : > { %1974 = vadd.xlane.f32.xlu0 %v1971_v24  ;;  %1972 = vadd.xlane.f32.xlu1 %v1970_v25 }
0x15b5   : > { %1989 = vperm.xlu1 %2976, %v3947_v16  }
0x15b9   : > { %2977 = vset.pattern.permute.xlu1 %v3329_v3 }
0x1631   : > { %v1975_v31 = vpop.xlane.xlu0 %1974  ;;  %v1973_v34 = vpop.xlane.xlu1 %1972 }
0x1632   : > { %v1976_v35 = vadd.f32 %v1975_v31, %v1973_v34  ;;  %v2671_v34 = vld [vmem:[%s4211_s3] ss:$0 sm:$0xff]  ;;  %s2600_s3 = sshll.u32 %s733_s17, 4  ;;  %s2401_s17 = scalar_lea.vmem (%p4214_p0), %s4215_s28, %s2683_s0 }
0x1633   : > { %s820_s27 = scalar_lea.vmem [#allocation13], %s2600_s3 }
0x1634   : > { %v1977_v36 = vmul.f32 0.00390625, %v1976_v35 }
0x1635   : > { %v1990_v44 = vpop.permute.xlu1 %1989 }
0x1636   : > { %v1978_v37 = vadd.f32 1e-05, %v1977_v36 }
0x1638   : > { %3059 = vrsqrt.f32 %v1978_v37 }
0x1642   : > { %v3060_v38 = vpop.eup %3059 }
0x1643   : > { %v1980_v39 = vmul.f32 %v3060_v38, %v3947_v16 }
0x1645   : > { %1983 = vperm.xlu0 %2975, %v1980_v39  }
0x1649   : > { %2978 = vset.pattern.permute.xlu0 %v3335_v43  ;;  %v2662_v43 = vld [vmem:[%s4209_s23] ss:$0 sm:$0xff] }
0x16c4   : > { %v1984_v42 = vpop.permute.xlu0 %1983 }
0x16c5   : > { %v1986_v54 = vmul.f32 %v1984_v42, %v1968_v22  ;;  %v1987_v45 = vmul.f32 %v1984_v42, %v1969_v55  ;;  %v3043_v22 = vld [vmem:[%s4210_s16 + $0x10] sm:$0xff]   ;;  %v3044_v55 = vld [vmem:[%s4210_s16 + $0x18] sm:$0xff]  }
0x16c7   : > { %v1992_v46 = vadd.f32 %v1990_v44, %v1986_v54  ;;  %v1993_v47 = vadd.f32 %v1990_v44, %v1987_v45 }
0x16c9   : > { %v1994_v48 = vmax.f32 %v1992_v46, 0.0  ;;  %v1995_v49 = vmax.f32 %v1993_v47, 0.0 }
0x16cb   : > { %v2013_v50 = vpack.c.bf16 %v1995_v49, %v1994_v48 }
0x16cd   : > { %2821 = vmatmul.mubr.bf16.vlgmr.msra.gmra.mrb[16].mxu0 %v2013_v50 }
0x16ce   : > { %2840 = vmatprep.mubr.msk.bf16.mxu0 %vm3334_vm2, %v3333_v57 }
0x17a0   : > { %v2102_v51 = vpop.f32.mrb[16].mxu0 }
0x17a1   : > { %v2103_v53 = vadd.f32 %v2662_v43, %v2102_v51  ;;  %v2822_v58 = vpop.f32.mrb[17].mxu0 }
0x17a2   : > { %v2105_v60 = vpop.f32.mrb[18].mxu0 }
0x17a3   : > { %v2106_v61 = vadd.f32 %v2662_v43, %v2105_v60  ;;  %v2823_v62 = vpop.f32.mrb[19].mxu0  ;;  %v2109_v63 = vsel %vm1335_vm3, %v2103_v53, 0.0 }
0x17a4   : > { %2110 = vadd.xlane.f32.xlu1 %v2109_v63 }
0x17a5   : > { %v2112_v15 = vsel %vm1335_vm3, %v2106_v61, 0.0 }
0x17a6   : > { %2113 = vadd.xlane.f32.xlu0 %v2112_v15  ;;  %v3045_v15 = vld [vmem:[%s4212_s2] sm:$0xff]  }
0x17a7   : > { %2837 = vmatpush3.bf16.msra.mxu0 %v3045_v15 }
0x17a8   : > { %2838 = vmatprep.subr.bf16.mxu0 %v3333_v57 }
0x1831   : > { %v2111_v0 = vpop.xlane.xlu1 %2110 }
0x1833   : > { %v2114_v1 = vpop.xlane.xlu0 %2113 }
0x1834   : > { %v2115_v2 = vadd.f32 %v2114_v1, %v2111_v0 }
0x1836   : > { %v2116_v4 = vmul.f32 0.0078125, %v2115_v2 }
0x1838   : > { %2119 = vperm.xlu1 %2977, %v2116_v4  }
0x183c   : > { %2979 = vset.pattern.permute.xlu1 %v3336_v59  ;;  %v3042_v59 = vld [vmem:[%s4210_s16 + $0x8] sm:$0xff]  }
0x183d   : > { %2145 = vperm.xlu1 %2979, %v3947_v16   ;;  %2827 = vmatpush3.bf16.msra.mxu1 %v3042_v59 }
0x183e   : > { %2828 = vmatprep.subr.bf16.mxu1 %v3333_v57 }
0x1841   : > { %2980 = vset.pattern.permute.xlu1 %v3329_v3  ;;  %2829 = vmatpush3.bf16.msra.mxu1 %v3043_v22 }
0x1842   : > { %2830 = vmatprep.subr.bf16.mxu1 %v3333_v57  ;;  %v2677_v57 = vld [vmem:[%s4213_s4] ss:$0 sm:$0xff] }
0x1845   : > { %2831 = vmatpush3.bf16.msra.mxu1 %v3044_v55 }
0x18b7   : > { %v2120_v52 = vpop.permute.xlu1 %2119 }
0x18b8   : > { %v2122_v17 = vsub.f32 %v2103_v53, %v2120_v52  ;;  %v2123_v5 = vsub.f32 %v2106_v61, %v2120_v52 }
0x18ba   : > { %v2124_v13 = vmul.f32 %v2122_v17, %v2122_v17  ;;  %v2125_v7 = vmul.f32 %v2123_v5, %v2123_v5 }
0x18bc   : > { %v2126_v6 = vsel %vm1335_vm3, %v2124_v13, 0.0  ;;  %v2129_v8 = vsel %vm1335_vm3, %v2125_v7, 0.0  ;;  %v2146_v25 = vpop.permute.xlu1 %2145 }
0x18bd   : > { %2127 = vadd.xlane.f32.xlu0 %v2126_v6 }
0x18c1   : > { %2130 = vadd.xlane.f32.xlu0 %v2129_v8 }
0x194a   : > { %v2128_v10 = vpop.xlane.xlu0 %2127 }
0x194e   : > { %v2131_v11 = vpop.xlane.xlu0 %2130 }
0x194f   : > { %v2132_v12 = vadd.f32 %v2131_v11, %v2128_v10 }
0x1951   : > { %v2133_v14 = vmul.f32 0.0078125, %v2132_v12 }
0x1953   : > { %v2134_v18 = vadd.f32 1e-05, %v2133_v14 }
0x1955   : > { %3061 = vrsqrt.f32 %v2134_v18 }
0x195f   : > { %v3062_v19 = vpop.eup %3061 }
0x1960   : > { %v2136_v20 = vmul.f32 %v3062_v19, %v3947_v16 }
0x1962   : > { %2139 = vperm.xlu0 %2978, %v2136_v20  }
0x1966   : > { %2981 = vset.pattern.permute.xlu0 %v3337_v32 }
0x19e1   : > { %v2140_v24 = vpop.permute.xlu0 %2139 }
0x19e2   : > { %v2142_v26 = vmul.f32 %v2140_v24, %v2122_v17  ;;  %v2143_v56 = vmul.f32 %v2140_v24, %v2123_v5 }
0x19e4   : > { %v2148_v27 = vadd.f32 %v2146_v25, %v2142_v26  ;;  %v2149_v28 = vadd.f32 %v2146_v25, %v2143_v56 }
0x19e6   : > { %v2150_v29 = vmax.f32 %v2148_v27, 0.0  ;;  %v2151_v30 = vmax.f32 %v2149_v28, 0.0 }
0x19e8   : > { %v2161_v31 = vpack.c.bf16 %v2151_v30, %v2150_v29 }
0x19ea   : > { %2833 = vmatmul.mubr.msk.bf16.vlgmr.msra.gmra.mrb[12].mxu1 %vm1335_vm3, %v2161_v31 }
0x1abd   : > { %v2229_v35 = vpop.f32.mrb[12].mxu1 }
0x1abe   : > { %v2230_v36 = vadd.f32 %v2671_v34, %v2229_v35  ;;  %v2834_v37 = vpop.f32.mrb[13].mxu1 }
0x1abf   : > { %v2232_v32 = vpop.f32.mrb[14].mxu1 }
0x1ac0   : > { %v2233_v38 = vadd.f32 %v2671_v34, %v2232_v32  ;;  %v2835_v39 = vpop.f32.mrb[15].mxu1  ;;  %v2236_v40 = vsel %vm1463_vm4, %v2230_v36, 0.0 }
0x1ac1   : > { %2237 = vadd.xlane.f32.xlu1 %v2236_v40 }
0x1ac2   : > { %v2239_v41 = vsel %vm1463_vm4, %v2233_v38, 0.0 }
0x1ac3   : > { %2240 = vadd.xlane.f32.xlu0 %v2239_v41 }
0x1b4e   : > { %v2238_v42 = vpop.xlane.xlu1 %2237 }
0x1b50   : > { %v2241_v44 = vpop.xlane.xlu0 %2240 }
0x1b51   : > { %v2242_v54 = vadd.f32 %v2241_v44, %v2238_v42 }
0x1b53   : > { %v2243_v45 = vmul.f32 0.015625, %v2242_v54 }
0x1b55   : > { %2246 = vperm.xlu1 %2980, %v2243_v45  }
0x1b59   : > { %2982 = vset.pattern.permute.xlu1 %v3338_v33 }
0x1bd4   : > { %v2247_v46 = vpop.permute.xlu1 %2246 }
0x1bd5   : > { %v2249_v47 = vsub.f32 %v2230_v36, %v2247_v46  ;;  %v2250_v48 = vsub.f32 %v2233_v38, %v2247_v46 }
0x1bd7   : > { %v2252_v49 = vmul.f32 %v2250_v48, %v2250_v48  ;;  %v2251_v50 = vmul.f32 %v2249_v47, %v2249_v47 }
0x1bd9   : > { %v2256_v43 = vsel %vm1463_vm4, %v2252_v49, 0.0  ;;  %v2253_v51 = vsel %vm1463_vm4, %v2251_v50, 0.0 }
0x1bda   : > { %2257 = vadd.xlane.f32.xlu0 %v2256_v43  ;;  %2254 = vadd.xlane.f32.xlu1 %v2253_v51 }
0x1beb   : > { %2272 = vperm.xlu1 %2982, %v3947_v16  }
0x1bef   : > { %2983 = vset.pattern.permute.xlu1 %v3329_v3  ;;  %v3046_v3 = vld [vmem:[%s4212_s2 + $0x8] sm:$0xff]  }
0x1bf0   : > { %2839 = vmatpush3.bf16.msra.mxu0 %v3046_v3 }
0x1c67   : > { %v2258_v53 = vpop.xlane.xlu0 %2257  ;;  %v2255_v58 = vpop.xlane.xlu1 %2254 }
0x1c68   : > { %v2259_v60 = vadd.f32 %v2258_v53, %v2255_v58 }
0x1c6a   : > { %v2260_v61 = vmul.f32 0.015625, %v2259_v60 }
0x1c6b   : > { %v2273_v1 = vpop.permute.xlu1 %2272 }
0x1c6c   : > { %v2261_v33 = vadd.f32 1e-05, %v2260_v61 }
0x1c6e   : > { %3063 = vrsqrt.f32 %v2261_v33 }
0x1c78   : > { %v3064_v62 = vpop.eup %3063 }
0x1c79   : > { %v2263_v63 = vmul.f32 %v3064_v62, %v3947_v16 }
0x1c7b   : > { %2266 = vperm.xlu0 %2981, %v2263_v63  }
0x1c7f   : > { %2984 = vset.pattern.permute.xlu0 %v3339_v21 }
0x1cfa   : > { %v2267_v0 = vpop.permute.xlu0 %2266 }
0x1cfb   : > { %v2269_v2 = vmul.f32 %v2267_v0, %v2249_v47  ;;  %v2270_v4 = vmul.f32 %v2267_v0, %v2250_v48 }
0x1cfd   : > { %v2275_v52 = vadd.f32 %v2273_v1, %v2269_v2  ;;  %v2276_v17 = vadd.f32 %v2273_v1, %v2270_v4 }
0x1cff   : > { %v2277_v5 = vmax.f32 %v2275_v52, 0.0  ;;  %v2278_v13 = vmax.f32 %v2276_v17, 0.0 }
0x1d01   : > { %v2284_v6 = vpack.c.bf16 %v2278_v13, %v2277_v5 }
0x1d03   : > { %2841 = vmatmul.mubr.msk.bf16.vlgmr.msra.gmra.mrb[20].mxu0 %vm1463_vm4, %v2284_v6 }
0x1dd6   : > { %v2340_v7 = vpop.f32.mrb[20].mxu0 }
0x1dd7   : > { %v2341_v8 = vadd.f32 %v2677_v57, %v2340_v7  ;;  %v2842_v9 = vpop.f32.mrb[21].mxu0 }
0x1dd8   : > { %v2343_v21 = vpop.f32.mrb[22].mxu0 }
0x1dd9   : > { %v2344_v59 = vadd.f32 %v2677_v57, %v2343_v21  ;;  %v2843_v10 = vpop.f32.mrb[23].mxu0  ;;  %v2347_v11 = vsel %vm1575_vm5, %v2341_v8, 0.0 }
0x1dda   : > { %2348 = vadd.xlane.f32.xlu1 %v2347_v11 }
0x1ddb   : > { %v2350_v12 = vsel %vm1575_vm5, %v2344_v59, 0.0 }
0x1ddc   : > { %2351 = vadd.xlane.f32.xlu0 %v2350_v12 }
0x1e67   : > { %v2349_v14 = vpop.xlane.xlu1 %2348 }
0x1e69   : > { %v2352_v18 = vpop.xlane.xlu0 %2351 }
0x1e6a   : > { %v2353_v19 = vadd.f32 %v2352_v18, %v2349_v14 }
0x1e6c   : > { %v2354_v20 = vmul.f32 0.125, %v2353_v19 }
0x1e6e   : > { %2357 = vperm.xlu1 %2983, %v2354_v20  }
0x1e72   : > { %2985 = vset.pattern.permute.xlu1 %v3340_v23 }
0x1e73   : > { %2383 = vperm.xlu1 %2985, %v3947_v16  }
0x1eed   : > { %v2358_v22 = vpop.permute.xlu1 %2357 }
0x1eee   : > { %v2360_v55 = vsub.f32 %v2341_v8, %v2358_v22  ;;  %v2361_v24 = vsub.f32 %v2344_v59, %v2358_v22 }
0x1ef0   : > { %v2362_v25 = vmul.f32 %v2360_v55, %v2360_v55  ;;  %v2363_v56 = vmul.f32 %v2361_v24, %v2361_v24 }
0x1ef2   : > { %v2364_v26 = vsel %vm1575_vm5, %v2362_v25, 0.0  ;;  %v2367_v27 = vsel %vm1575_vm5, %v2363_v56, 0.0  ;;  %v2384_v32 = vpop.permute.xlu1 %2383 }
0x1ef3   : > { %2365 = vadd.xlane.f32.xlu0 %v2364_v26 }
0x1ef7   : > { %2368 = vadd.xlane.f32.xlu0 %v2367_v27 }
0x1f80   : > { %v2366_v28 = vpop.xlane.xlu0 %2365 }
0x1f84   : > { %v2369_v29 = vpop.xlane.xlu0 %2368 }
0x1f85   : > { %v2370_v30 = vadd.f32 %v2369_v29, %v2366_v28 }
0x1f87   : > { %v2371_v31 = vmul.f32 0.125, %v2370_v30 }
0x1f89   : > { %v2372_v34 = vadd.f32 1e-05, %v2371_v31 }
0x1f8b   : > { %3065 = vrsqrt.f32 %v2372_v34 }
0x1f95   : > { %v3066_v35 = vpop.eup %3065 }
0x1f96   : > { %v2374_v36 = vmul.f32 %v3066_v35, %v3947_v16 }
0x1f98   : > { %2377 = vperm.xlu0 %2984, %v2374_v36  }
0x1f9c   : > { %2986 = vset.pattern.permute.xlu0 %v3340_v23 }
0x2017   : > { %v2378_v37 = vpop.permute.xlu0 %2377 }
0x2018   : > { %v2380_v38 = vmul.f32 %v2378_v37, %v2360_v55  ;;  %v2381_v39 = vmul.f32 %v2378_v37, %v2361_v24  ;;  %2399 = sbr.rel (!%p4214_p0) target bundleno = 8231 (0x2027), region = 144 }
0x201a   : > { %v2386_v40 = vadd.f32 %v2384_v32, %v2380_v38  ;;  %v2387_v41 = vadd.f32 %v2384_v32, %v2381_v39 }
0x201c   : > { %v2388_v42 = vmax.f32 %v2386_v40, 0.0  ;;  %v2389_v44 = vmax.f32 %v2387_v41, 0.0 }
0x201e   : > { %2390 = vst.msk [vmem:[%s820_s27] sm:$0xff] %vm1575_vm5, %v2388_v42  ;;  %2681 = vst.msk [vmem:[%s820_s27 + $0x8] sm:$0xff] %vm1575_vm5, %v2389_v44 }
0x2025   : > { %v2431_v23 = vld [vmem:[%s820_s27] sm:$0xff]  ;;  %v2433_v16 = vld [vmem:[%s820_s27 + $0x8] sm:$0xff] }
0x2026   : > { %2432 = vst [vmem:[%s2401_s17] sm:$0xff] %v2431_v23  ;;  %2434 = vst [vmem:[%s2401_s17 + $0x10] sm:$0xff] %v2433_v16 }
0x2027 PF: > { %p34_p1 = scmp.ge.s32.totalorder %s3639_s7, 4   ;;  %s4216_s4 = smov %s3311_s30 }
0x2028   : > { %s4217_s30 = smov %s3315_s24  ;;  %s4218_s24 = smov %s3651_s21 }
0x2029   : > { %s4219_s25 = smov %s3639_s7  ;;  %36 = sbr.rel (!%p34_p1) target bundleno = 22 (0x16), region = 220 }
0x2030   :  { %2450 = vsyncpa [#allocation3], 1 }
0x2031   :  { %2452 = vsyncpa [#allocation3 + $0x1], 1 }
0x2032   :  { %2453 = vsyncpa [#allocation5], 1 }
0x2033   :  { %2454 = vsyncpa [#allocation9], 1 }
0x2034   :  { %2455 = vsyncpa [#allocation12], 1 }

</bundles_post_ra>
